<compile_context>
chip_gen: v7x
topology: tpu7x:2x2x1
jax: 0.10.0
libtpu: 0.0.40
codegen_flags: <defaults>
</compile_context>

<pallas_src>
import jax
import jax.numpy as jnp
from jax.experimental import pallas as pl
from jax.experimental.pallas import tpu as pltpu

_VMEM_TILE_BUDGET = 12 << 20    # live tile footprint budget (see _N_TILES_LIVE)
_VMEM_LIMIT_BYTES = 24 << 20    # scoped VMEM limit passed to Mosaic (v7x-safe)
_MIN_STEP_BYTES = 2 << 20       # keep >= ~2 MiB of HBM traffic per grid step
_TARGET_MIN_STEPS = 8           # aim for >= 8 grid steps when the input allows
_PALLAS_MIN_BYTES = 512 * 1024  # below this, plain fused XLA is faster
_N_TILES_LIVE = 12              # (1 input + 5 outputs) x 2 (double-buffered)


def _elementwise_kernel(x_ref, add_ref, sub_ref, mul_ref, div_ref, sq_ref):
    # All refs are (tile_r, tile_c); one shared read of x, five lane-dense writes.
    x = x_ref[...]
    add_ref[...] = x + 2.0
    sub_ref[...] = x - 2.0
    mul_ref[...] = x * 2.0
    div_ref[...] = x * 0.5      # exact for floats; == true division by 2
    sq_ref[...] = x * x         # == the python double loop of x[i][j] ** 2


def _forward_jnp(x):
    """Plain-XLA fallback (tiny inputs / non-float dtypes)."""
    return {
        "addition": x + 2,
        "subtraction": x - 2,
        "multiplication": x * 2,
        "division": x / 2,      # true division, matches PyTorch
        "squared": x * x,
    }


def _sublane_multiple(itemsize):
    # Sublane packing: 8 rows for 32-bit, 16 for 16-bit, 32 for 8-bit dtypes.
    return max(8, 32 // itemsize)


def _round_down(v, m):
    return max(m, (v // m) * m)


def _round_up(v, m):
    return -(-v // m) * m


def _choose_tiles(R, C, itemsize):
    """Pick (tile_r, tile_c) per the VMEM budget / step-count / step-bytes rules."""
    sub = _sublane_multiple(itemsize)

    # Column tile: full C unless even minimal-height tiles would blow the budget.
    if _N_TILES_LIVE * sub * C * itemsize <= _VMEM_TILE_BUDGET:
        tile_c = C
    else:
        tile_c = _round_down(
            _VMEM_TILE_BUDGET // (_N_TILES_LIVE * sub * itemsize), 128
        )
        tile_c = min(tile_c, C)

    # Row tile: fits the VMEM budget ...
    budget_r = _round_down(
        _VMEM_TILE_BUDGET // (_N_TILES_LIVE * tile_c * itemsize), sub
    )
    # ... small enough to give >= ~8 grid steps when R allows ...
    steps_r = _round_down(R // _TARGET_MIN_STEPS, sub)
    # ... but big enough that each step moves >= ~2 MiB of HBM traffic.
    floor_r = _round_up(-(-_MIN_STEP_BYTES // (6 * tile_c * itemsize)), sub)

    tile_r = min(budget_r, max(steps_r, floor_r))
    if tile_r >= R:
        tile_r = R               # full extent: always a legal block dim
    return tile_r, tile_c


def pt_module_forward(x, tile_r=None, use_pallas=None):
    """Returns a dict matching PtModule.forward semantics."""
    R, C = x.shape
    itemsize = jnp.dtype(x.dtype).itemsize
    is_float = jnp.issubdtype(x.dtype, jnp.floating)

    if use_pallas is None:
        use_pallas = is_float and (R * C * itemsize >= _PALLAS_MIN_BYTES)
    if not is_float:
        # Integer dtypes stay on the XLA path: keeps `/ 2` as true division and
        # never writes float results into integer-typed refs.
        use_pallas = False
    if not use_pallas:
        return _forward_jnp(x)

    auto_r, tile_c = _choose_tiles(R, C, itemsize)
    if tile_r is None:
        tile_r = auto_r
    else:
        # Validate caller-supplied tile_r against the (8, 128) block constraint.
        sub = _sublane_multiple(itemsize)
        tile_r = min(int(tile_r), R)
        if tile_r < R:
            tile_r = min(_round_down(tile_r, sub), R)

    grid = (pl.cdiv(R, tile_r), pl.cdiv(C, tile_c))
    block = pl.BlockSpec((tile_r, tile_c), lambda i, j: (i, j))
    out_sds = jax.ShapeDtypeStruct((R, C), x.dtype)

    outs = pl.pallas_call(
        _elementwise_kernel,
        grid=grid,
        in_specs=[block],
        out_specs=(block,) * 5,
        out_shape=(out_sds,) * 5,
        compiler_params=pltpu.CompilerParams(
            dimension_semantics=("parallel", "parallel"),
            vmem_limit_bytes=_VMEM_LIMIT_BYTES,
        ),
        cost_estimate=pl.CostEstimate(
            flops=5 * R * C,
            transcendentals=0,
            bytes_accessed=6 * R * C * itemsize,
        ),
    )(x)

    add, sub_, mul, div, sq = outs
    return {
        "addition": add,
        "subtraction": sub_,
        "multiplication": mul,
        "division": div,
        "squared": sq,
    }


def _check(results, x):
    assert jnp.allclose(results["addition"], x + 2)
    assert jnp.allclose(results["subtraction"], x - 2)
    assert jnp.allclose(results["multiplication"], x * 2)
    assert jnp.allclose(results["division"], x / 2)
    assert jnp.allclose(results["squared"], x * x)


if __name__ == "__main__":
    # Main test: auto-dispatch takes the Pallas path; tile selection yields a
    # multi-step row grid with a partial final block.
    x = jax.random.normal(jax.random.PRNGKey(0), (512, 512), dtype=jnp.float32)
    results = pt_module_forward(x)
    jax.block_until_ready(results)
    _check(results, x)

    # Non-divisible R + caller-supplied tile_r exercises partial-block masking
    # on writeback (last block has only 8 valid rows).
    x_odd = jax.random.normal(jax.random.PRNGKey(1), (200, 384), dtype=jnp.float32)
    results_odd = pt_module_forward(x_odd, tile_r=48, use_pallas=True)
    jax.block_until_ready(results_odd)
    _check(results_odd, x_odd)

    # bf16 exercises the 16-row sublane-packing path.
    x_bf16 = jax.random.normal(jax.random.PRNGKey(2), (256, 256), dtype=jnp.bfloat16)
    results_bf16 = pt_module_forward(x_bf16, use_pallas=True)
    jax.block_until_ready(results_bf16)
    _check(results_bf16, x_bf16)

    # Tiny input auto-dispatches to the fused-XLA fast path.
    x_small = jax.random.normal(jax.random.PRNGKey(3), (8, 128), dtype=jnp.float32)
    results_small = pt_module_forward(x_small)
    jax.block_until_ready(results_small)
    _check(results_small, x_small)

    print("KERNEL_OK")
</pallas_src>

<mosaic_0001>
module attributes {stable_mosaic.version = 11 : i64} {
  func.func @_elementwise_kernel(%arg0: i32, %arg1: i32, %arg2: memref<176x512xf32, #tpu.memory_space<vmem>>, %arg3: memref<176x512xf32, #tpu.memory_space<vmem>>, %arg4: memref<176x512xf32, #tpu.memory_space<vmem>>, %arg5: memref<176x512xf32, #tpu.memory_space<vmem>>, %arg6: memref<176x512xf32, #tpu.memory_space<vmem>>, %arg7: memref<176x512xf32, #tpu.memory_space<vmem>>) attributes {dimension_semantics = [#tpu.dimension_semantics<parallel>, #tpu.dimension_semantics<parallel>], iteration_bounds = array<i64: 3, 1>, scalar_prefetch = 0 : i64, scratch_operands = 0 : i64, tpu.core_type = #tpu.core_type<tc>, window_params = [{transform_indices = @transform_0, window_bounds = array<i64: 176, 512>}, {transform_indices = @transform_1, window_bounds = array<i64: 176, 512>}, {transform_indices = @transform_2, window_bounds = array<i64: 176, 512>}, {transform_indices = @transform_3, window_bounds = array<i64: 176, 512>}, {transform_indices = @transform_4, window_bounds = array<i64: 176, 512>}, {transform_indices = @transform_5, window_bounds = array<i64: 176, 512>}]} {
    %c0 = arith.constant 0 : index
    %c0_0 = arith.constant 0 : index
    %0 = vector.load %arg2[%c0, %c0_0] : memref<176x512xf32, #tpu.memory_space<vmem>>, vector<176x512xf32>
    %cst = arith.constant 2.000000e+00 : f32
    %1 = vector.broadcast %cst : f32 to vector<176x512xf32>
    %2 = arith.addf %0, %1 : vector<176x512xf32>
    %c0_1 = arith.constant 0 : index
    %c0_2 = arith.constant 0 : index
    %3 = vector.load %arg3[%c0_1, %c0_2] : memref<176x512xf32, #tpu.memory_space<vmem>>, vector<176x512xf32>
    tpu.vector_store %arg3[%c0_1, %c0_2], %2 {strides = array<i32>} : memref<176x512xf32, #tpu.memory_space<vmem>>, vector<176x512xf32>,
    %cst_3 = arith.constant 2.000000e+00 : f32
    %4 = vector.broadcast %cst_3 : f32 to vector<176x512xf32>
    %5 = arith.subf %0, %4 : vector<176x512xf32>
    %c0_4 = arith.constant 0 : index
    %c0_5 = arith.constant 0 : index
    %6 = vector.load %arg4[%c0_4, %c0_5] : memref<176x512xf32, #tpu.memory_space<vmem>>, vector<176x512xf32>
    tpu.vector_store %arg4[%c0_4, %c0_5], %5 {strides = array<i32>} : memref<176x512xf32, #tpu.memory_space<vmem>>, vector<176x512xf32>,
    %cst_6 = arith.constant 2.000000e+00 : f32
    %7 = vector.broadcast %cst_6 : f32 to vector<176x512xf32>
    %8 = arith.mulf %0, %7 : vector<176x512xf32>
    %c0_7 = arith.constant 0 : index
    %c0_8 = arith.constant 0 : index
    %9 = vector.load %arg5[%c0_7, %c0_8] : memref<176x512xf32, #tpu.memory_space<vmem>>, vector<176x512xf32>
    tpu.vector_store %arg5[%c0_7, %c0_8], %8 {strides = array<i32>} : memref<176x512xf32, #tpu.memory_space<vmem>>, vector<176x512xf32>,
    %cst_9 = arith.constant 5.000000e-01 : f32
    %10 = vector.broadcast %cst_9 : f32 to vector<176x512xf32>
    %11 = arith.mulf %0, %10 : vector<176x512xf32>
    %c0_10 = arith.constant 0 : index
    %c0_11 = arith.constant 0 : index
    %12 = vector.load %arg6[%c0_10, %c0_11] : memref<176x512xf32, #tpu.memory_space<vmem>>, vector<176x512xf32>
    tpu.vector_store %arg6[%c0_10, %c0_11], %11 {strides = array<i32>} : memref<176x512xf32, #tpu.memory_space<vmem>>, vector<176x512xf32>,
    %13 = arith.mulf %0, %0 : vector<176x512xf32>
    %c0_12 = arith.constant 0 : index
    %c0_13 = arith.constant 0 : index
    %14 = vector.load %arg7[%c0_12, %c0_13] : memref<176x512xf32, #tpu.memory_space<vmem>>, vector<176x512xf32>
    tpu.vector_store %arg7[%c0_12, %c0_13], %13 {strides = array<i32>} : memref<176x512xf32, #tpu.memory_space<vmem>>, vector<176x512xf32>,
    return
  }
  func.func @transform_0(%arg0: i32, %arg1: i32) -> (i32, i32) {
    %c0_i32 = arith.constant 0 : i32
    return %arg0, %arg1 : i32, i32
  }
  func.func @transform_1(%arg0: i32, %arg1: i32) -> (i32, i32) {
    %c0_i32 = arith.constant 0 : i32
    return %arg0, %arg1 : i32, i32
  }
  func.func @transform_2(%arg0: i32, %arg1: i32) -> (i32, i32) {
    %c0_i32 = arith.constant 0 : i32
    return %arg0, %arg1 : i32, i32
  }
  func.func @transform_3(%arg0: i32, %arg1: i32) -> (i32, i32) {
    %c0_i32 = arith.constant 0 : i32
    return %arg0, %arg1 : i32, i32
  }
  func.func @transform_4(%arg0: i32, %arg1: i32) -> (i32, i32) {
    %c0_i32 = arith.constant 0 : i32
    return %arg0, %arg1 : i32, i32
  }
  func.func @transform_5(%arg0: i32, %arg1: i32) -> (i32, i32) {
    %c0_i32 = arith.constant 0 : i32
    return %arg0, %arg1 : i32, i32
  }
}

</mosaic_0001>

<bundles_post_ra>
// kernel: tpu_custom_call.1
= control target key start
LH: loop header
LB: loop body
LE: loop exit
PB: predicated region body
PF: predicated region fallthrough
CT: control target
= control target key end

     0   :  { %s4101_s0 = inlined_call_operand.hbm [shape: f32[512,512], index: 0, kind: input, shape index: {}]   ;;  %s4102_s1 = inlined_call_operand.hbm [shape: f32[512,512], index: 1, kind: output, shape index: {0}]   ;;  %s4103_s2 = inlined_call_operand.hbm [shape: f32[512,512], index: 2, kind: output, shape index: {1}]   ;;  %s4104_s3 = inlined_call_operand.hbm [shape: f32[512,512], index: 3, kind: output, shape index: {2}]   ;;  %s4105_s4 = inlined_call_operand.hbm [shape: f32[512,512], index: 4, kind: output, shape index: {3}]   ;;  %s4106_s5 = inlined_call_operand.hbm [shape: f32[512,512], index: 5, kind: output, shape index: {4}]  }
   0x1   :  { %4200 = sst [smem:[#allocation62_spill]] %s4101_s0 }
   0x2   :  { %11 = vsyncpa [#allocation3], 0 }
   0x3   :  { %13 = vsyncpa [#allocation3 + $0x1], 0 }
   0x4   :  { %14 = vsyncpa [#allocation4], 0 }
   0x5   :  { %16 = vsyncpa [#allocation4 + $0x1], 0 }
   0x6   :  { %17 = vsyncpa [#allocation7], 0 }
   0x7   :  { %19 = vsyncpa [#allocation7 + $0x1], 0 }
   0x8   :  { %20 = vsyncpa [#allocation10], 0 }
   0x9   :  { %22 = vsyncpa [#allocation10 + $0x1], 0  ;;  %s2305_s18 = smov 0   ;;  %s2307_s19 = smov 0  }
   0xa   :  { %s2309_s20 = smov 0   ;;  %s2311_s21 = smov 0  }
   0xb   :  { %s2313_s22 = smov 0   ;;  %s2315_s23 = smov 0  }
   0xc LB: > { %4201 = sst [smem:[#allocation16_spill]] %s2251_s22  ;;  %s2336_s24 = sadd.s32 4294967295, %s2255_s23   ;;  %s2255_s23 = sphi %s2315_s23, %s28_s23   ;;  %s2251_s22 = sphi %s2313_s22, %s4345_s22   ;;  %s2247_s21 = sphi %s2311_s21, %s4344_s21   ;;  %s2243_s20 = sphi %s2309_s20, %s4348_s20   ;;  %s2239_s19 = sphi %s2307_s19, %s4347_s19   ;;  %s2235_s18 = sphi %s2305_s18, %s4346_s18  }
   0xd   : > { %s4107_s25 = sadd.s32 4294967294, %s2255_s23   ;;  %s40_s26 = sadd.s32 1, %s2251_s22 }
   0xe   : > { %s49_s27 = sadd.s32 1, %s2243_s20  ;;  %p42_p0 = scmp.ge.s32.totalorder %s40_s26, 3 }
   0xf   : > { %p56_p1 = scmp.ne.s32.totalorder %s2243_s20, %s2239_s19  ;;  %p57_p2 = scmp.eq.s32.totalorder %s2255_s23, 0 }
  0x10   : > { %p62_p3 = scmp.ne.s32.totalorder %s2239_s19, %s2235_s18  ;;  %s4350_s26 = smov (%p42_p0, %s40_s26), 0 }
  0x11   : > { %4202 = sst [smem:[#allocation17_spill]] %s4350_s26  ;;  %p58_p4 = por %p57_p2, %p56_p1 }
  0x12   : > { %p63_p5 = scmp.eq.s32.totalorder %s2336_s24, 0  ;;  %s44_s28 = ssub.s32 %s2251_s22, %s4350_s26 }
  0x13   : > { %p88_p6 = scmp.eq.s32.totalorder %s2336_s24, 2  ;;  %p47_p7 = scmp.eq.s32.totalorder %s44_s28, 0 }
  0x14   : > { %p2352_p8 = por %p63_p5, %p62_p3  ;;  %p94_p10 = scmp.eq.s32.totalorder %s4107_s25, 2 }
  0x15   : > { %p2356_p9 = por %p88_p6, %p56_p1  ;;  %p1694_p12 = scmp.ge.s32.totalorder %s2255_s23, 3 }
  0x16   : > { %s2363_s6 = scalar_select %p47_p7, %s2243_s20, %s49_s27  }
  0x17   : > { %p2365_p11 = por %p94_p10, %p62_p3  ;;  %222 = sbr.rel (%p1694_p12) target bundleno = 70 (0x46), region = 16 }
  0x19   : > { %s4205_s7 = scalar_select %p2365_p11, 1, 0 }
  0x1e   : > { %225 = sbr.rel (!%p58_p4) target bundleno = 70 (0x46), region = 20  ;;  %s226_s8 = sand.u32 (%p58_p4), 1, %s2243_s20  }
  0x1f   : > { %s231_s9 = smul.u32 (%p58_p4), 22, %s2251_s22  ;;  %s2375_s14 = scalar_lea.sflag (%p58_p4), [#allocation3], %s226_s8 }
  0x20   : > { %s1852_s10 = smul.u32 (%p58_p4), 704, %s226_s8 }
  0x21   : > { %s233_s11 = ssub.s32 (%p58_p4), 64, %s231_s9 }
  0x22   : > { %p234_p13 = scmp.lt.s32.totalorder (%p58_p4), %s233_s11, 22  ;;  %s230_s15 = scalar_lea.vmem (%p58_p4), [#allocation2], %s1852_s10 }
  0x25   : > { %s4352_s11 = smov (!%p234_p13, %s233_s11), 22 }
  0x26   : > { %s2372_s12 = sshll.u32 %s4352_s11, 9 }
  0x27   : > { %s239_s13 = ssub.s32 11264, %s2372_s12 }
  0x28   : > { %240 = vsyncadd %s2375_s14, %s239_s13  ;;  %p1697_p0 = scmp.ne.s32.totalorder %s2372_s12, 0  ;;  %s1846_s16 = smul.u32 11264, %s2251_s22 }
  0x29   : > { %s247_s17 = sshll.u32 %s230_s15, 4  ;;  %s4206_s0 = sld [smem:[#allocation62_spill]]  ;;  %s2385_s17 = int_to_ptr.vmem [resolvable:$true] %s247_s17 }
  0x2f   : > { %s2383_s9 = scalar_lea.hbm %s4206_s0, %s1846_s16  ;;  %s2029_s13 = scalar_lea.hbm %s4206_s0, 32768 }
  0x30   : > { %s2025_s8 = scalar_lea.hbm %s2383_s9, %s2372_s12  ;;  %p2030_p4 = scmp.lt.u32.totalorder %s2383_s9, %s4206_s0 }
  0x31   : > { %p2026_p1 = scmp.ne.s32.totalorder %s2383_s9, %s2025_s8  ;;  %p2031_p5 = scmp.lt.u32.totalorder %s2029_s13, %s2025_s8 }
  0x32   : > { %p2033_p7 = scmp.lt.u32.totalorder %s2025_s8, %s2383_s9 }
  0x33   : > { %p2027_p2 = pnand %p2026_p1, %p1697_p0  ;;  %p2032_p6 = por %p2031_p5, %p2030_p4 }
  0x35   : > { %p2028_p3 = pneg %p2027_p2  ;;  %p2034_p10 = por %p2033_p7, %p2032_p6 }
  0x37   : > { %p2035_p12 = pnand %p2034_p10, %p2028_p3 }
  0x39   : > { %2038 = shalt.err (!%p2035_p12)
}
  0x3a   : > { %s2039_s16 = scalar_lea.vmem %s2385_s17, %s2372_s12  ;;  %s2257_s27 = smov [#allocation2]  }
  0x3b   : > { %p2040_p13 = scmp.ne.s32.totalorder %s2385_s17, %s2039_s16  ;;  %s2043_s28 = sshll.u32 %s2257_s27, 4  ;;  %s2044_s28 = int_to_ptr.vmem [resolvable:$false] %s2043_s28 }
  0x3c   : > { %s2045_s25 = scalar_lea.vmem %s2044_s28, 22528  ;;  %p2046_p11 = scmp.lt.s32.totalorder %s2385_s17, %s2044_s28 }
  0x3d   : > { %p2041_p1 = pnand %p2040_p13, %p1697_p0  ;;  %p2047_p4 = scmp.lt.s32.totalorder %s2045_s25, %s2039_s16 }
  0x3f   : > { %p2042_p2 = pneg %p2041_p1  ;;  %p2048_p5 = por %p2047_p4, %p2046_p11 }
  0x41   : > { %p2049_p6 = pnand %p2048_p5, %p2042_p2 }
  0x43   : > { %2052 = shalt.err (!%p2049_p6)
}
  0x44   : > { %s2258_s8 = smov 512   ;;  %s2259_s10 = smov 32  }
  0x45   : > { %253 = dma.hbm_to_vmem [thread:$0]  (%p1697_p0), %s2383_s9, %s2372_s12, %s2385_s17, %s2375_s14, %s2258_s8, %s2258_s8, %s2259_s10  }
  0x46 PF: > { %p1702_p3 = scmp.ge.s32.totalorder %s2255_s23, 1  ;;  %p255_p7 = scmp.lt.s32.totalorder %s2255_s23, 4 }
  0x48   : > { %p256_p10 = pnand %p1702_p3, %p255_p7 }
  0x4a   : > { %259 = sbr.rel (%p256_p10) target bundleno = 504 (0x1f8), region = 24 }
  0x51   : > { %s2415_s11 = sand.u32 1, %s2239_s19  }
  0x52   : > { %s2418_s13 = smul.u32 704, %s2415_s11  ;;  %s262_s15 = scalar_lea.sflag [#allocation3], %s2415_s11 }
  0x54   : > { %s2422_s16 = scalar_lea.vmem [#allocation2], %s2418_s13 }
  0x55   : > { %2218 = dma.done.wait (%p2352_p8), %s262_s15, 11264  }
  0x56   : > { %2220 = vsyncadd (%p2352_p8), %s262_s15, 4294956032  ;;  %s1327_s12 = sand.u32 1, %s2336_s24   ;;  %v2430_v0 = vld [vmem:[%s2422_s16] sm:$0xff]  ;;  %v2433_v1 = vld [vmem:[%s2422_s16 + $0x8] sm:$0xff]  ;;  %s2467_s29 = scalar_lea.vmem [#allocation5], %s2418_s13 }
  0x57   : > { %v2436_v2 = vld [vmem:[%s2422_s16 + $0x10] sm:$0xff]  ;;  %v442_v3 = vadd.f32 2.0, %v2430_v0  ;;  %v443_v4 = vadd.f32 2.0, %v2433_v1  ;;  %v2442_v6 = vld [vmem:[%s2422_s16 + $0x18] sm:$0xff]  ;;  %v2445_v7 = vld [vmem:[%s2422_s16 + $0x20] sm:$0xff]  ;;  %v1146_v9 = vmul.f32 %v2430_v0, %v2430_v0  ;;  %v1147_v16 = vmul.f32 %v2433_v1, %v2433_v1  ;;  %s2485_s14 = scalar_lea.vmem [#allocation11], %s2418_s13 }
  0x58   : > { %v444_v5 = vadd.f32 2.0, %v2436_v2  ;;  %v2448_v8 = vld [vmem:[%s2422_s16 + $0x28] sm:$0xff]  ;;  %v445_v10 = vadd.f32 2.0, %v2442_v6  ;;  %v446_v11 = vadd.f32 2.0, %v2445_v7  ;;  %v2456_v13 = vld [vmem:[%s2422_s16 + $0x30] sm:$0xff]  ;;  %v2459_v14 = vld [vmem:[%s2422_s16 + $0x38] sm:$0xff]  ;;  %v1148_v23 = vmul.f32 %v2436_v2, %v2436_v2 }
  0x59   : > { %v447_v12 = vadd.f32 2.0, %v2448_v8  ;;  %v2462_v15 = vld [vmem:[%s2422_s16 + $0x40] sm:$0xff]  ;;  %530 = vst [vmem:[%s2467_s29] sm:$0xff] %v442_v3  ;;  %531 = vst [vmem:[%s2467_s29 + $0x8] sm:$0xff] %v443_v4  ;;  %v448_v17 = vadd.f32 2.0, %v2456_v13  ;;  %v449_v18 = vadd.f32 2.0, %v2459_v14  ;;  %v2476_v20 = vld [vmem:[%s2422_s16 + $0x48] sm:$0xff]  ;;  %v1149_v30 = vmul.f32 %v2442_v6, %v2442_v6 }
  0x5a   : > { %532 = vst [vmem:[%s2467_s29 + $0x10] sm:$0xff] %v444_v5  ;;  %v450_v19 = vadd.f32 2.0, %v2462_v15  ;;  %v2479_v21 = vld [vmem:[%s2422_s16 + $0x50] sm:$0xff]  ;;  %v2482_v22 = vld [vmem:[%s2422_s16 + $0x58] sm:$0xff]  ;;  %1234 = vst [vmem:[%s2485_s14] sm:$0xff] %v1146_v9  ;;  %v451_v24 = vadd.f32 2.0, %v2476_v20  ;;  %v1150_v37 = vmul.f32 %v2445_v7, %v2445_v7  ;;  %v1151_v44 = vmul.f32 %v2448_v8, %v2448_v8  ;;  %s2963_s17 = scalar_lea.vmem [#allocation6], %s2418_s13 }
  0x5b   : > { %533 = vst [vmem:[%s2467_s29 + $0x18] sm:$0xff] %v445_v10  ;;  %534 = vst [vmem:[%s2467_s29 + $0x20] sm:$0xff] %v446_v11  ;;  %v452_v25 = vadd.f32 2.0, %v2479_v21  ;;  %v453_v26 = vadd.f32 2.0, %v2482_v22  ;;  %v2497_v27 = vld [vmem:[%s2422_s16 + $0x60] sm:$0xff]  ;;  %v2500_v28 = vld [vmem:[%s2422_s16 + $0x68] sm:$0xff]  ;;  %v1152_v51 = vmul.f32 %v2456_v13, %v2456_v13  ;;  %v1153_v58 = vmul.f32 %v2459_v14, %v2459_v14 }
  0x5c   : > { %535 = vst [vmem:[%s2467_s29 + $0x28] sm:$0xff] %v447_v12  ;;  %v2503_v29 = vld [vmem:[%s2422_s16 + $0x70] sm:$0xff]  ;;  %1235 = vst [vmem:[%s2485_s14 + $0x8] sm:$0xff] %v1147_v16  ;;  %v454_v31 = vadd.f32 2.0, %v2497_v27  ;;  %v455_v32 = vadd.f32 2.0, %v2500_v28  ;;  %v2515_v34 = vld [vmem:[%s2422_s16 + $0x78] sm:$0xff]  ;;  %v1154_v4 = vmul.f32 %v2462_v15, %v2462_v15 }
  0x5d   : > { %536 = vst [vmem:[%s2467_s29 + $0x30] sm:$0xff] %v448_v17  ;;  %537 = vst [vmem:[%s2467_s29 + $0x38] sm:$0xff] %v449_v18  ;;  %v456_v33 = vadd.f32 2.0, %v2503_v29  ;;  %v2518_v35 = vld [vmem:[%s2422_s16 + $0x80] sm:$0xff]  ;;  %v2521_v36 = vld [vmem:[%s2422_s16 + $0x88] sm:$0xff]  ;;  %v457_v38 = vadd.f32 2.0, %v2515_v34  ;;  %v1155_v17 = vmul.f32 %v2476_v20, %v2476_v20 }
  0x5e   : > { %538 = vst [vmem:[%s2467_s29 + $0x40] sm:$0xff] %v450_v19  ;;  %1236 = vst [vmem:[%s2485_s14 + $0x10] sm:$0xff] %v1148_v23  ;;  %v458_v39 = vadd.f32 2.0, %v2518_v35  ;;  %v459_v40 = vadd.f32 2.0, %v2521_v36  ;;  %v2533_v41 = vld [vmem:[%s2422_s16 + $0x90] sm:$0xff]  ;;  %v2536_v42 = vld [vmem:[%s2422_s16 + $0x98] sm:$0xff] }
  0x5f   : > { %539 = vst [vmem:[%s2467_s29 + $0x48] sm:$0xff] %v451_v24  ;;  %540 = vst [vmem:[%s2467_s29 + $0x50] sm:$0xff] %v452_v25  ;;  %v2539_v43 = vld [vmem:[%s2422_s16 + $0xa0] sm:$0xff]  ;;  %v460_v45 = vadd.f32 2.0, %v2533_v41  ;;  %v461_v46 = vadd.f32 2.0, %v2536_v42  ;;  %v2551_v48 = vld [vmem:[%s2422_s16 + $0xa8] sm:$0xff] }
  0x60   : > { %541 = vst [vmem:[%s2467_s29 + $0x58] sm:$0xff] %v453_v26  ;;  %1237 = vst [vmem:[%s2485_s14 + $0x18] sm:$0xff] %v1149_v30  ;;  %v462_v47 = vadd.f32 2.0, %v2539_v43  ;;  %v2554_v49 = vld [vmem:[%s2422_s16 + $0xb0] sm:$0xff]  ;;  %v2557_v50 = vld [vmem:[%s2422_s16 + $0xb8] sm:$0xff]  ;;  %v463_v52 = vadd.f32 2.0, %v2551_v48  ;;  %v1156_v30 = vmul.f32 %v2479_v21, %v2479_v21 }
  0x61   : > { %542 = vst [vmem:[%s2467_s29 + $0x60] sm:$0xff] %v454_v31  ;;  %543 = vst [vmem:[%s2467_s29 + $0x68] sm:$0xff] %v455_v32  ;;  %v464_v53 = vadd.f32 2.0, %v2554_v49  ;;  %v465_v54 = vadd.f32 2.0, %v2557_v50  ;;  %v2569_v55 = vld [vmem:[%s2422_s16 + $0xc0] sm:$0xff]  ;;  %v2572_v56 = vld [vmem:[%s2422_s16 + $0xc8] sm:$0xff] }
  0x62   : > { %544 = vst [vmem:[%s2467_s29 + $0x70] sm:$0xff] %v456_v33  ;;  %1238 = vst [vmem:[%s2485_s14 + $0x20] sm:$0xff] %v1150_v37  ;;  %v2575_v57 = vld [vmem:[%s2422_s16 + $0xd0] sm:$0xff]  ;;  %v466_v59 = vadd.f32 2.0, %v2569_v55  ;;  %v467_v60 = vadd.f32 2.0, %v2572_v56  ;;  %v2587_v62 = vld [vmem:[%s2422_s16 + $0xd8] sm:$0xff] }
  0x63   : > { %545 = vst [vmem:[%s2467_s29 + $0x78] sm:$0xff] %v457_v38  ;;  %546 = vst [vmem:[%s2467_s29 + $0x80] sm:$0xff] %v458_v39  ;;  %v468_v61 = vadd.f32 2.0, %v2575_v57  ;;  %v2590_v63 = vld [vmem:[%s2422_s16 + $0xe0] sm:$0xff]  ;;  %v2593_v3 = vld [vmem:[%s2422_s16 + $0xe8] sm:$0xff]  ;;  %v469_v5 = vadd.f32 2.0, %v2587_v62 }
  0x64   : > { %547 = vst [vmem:[%s2467_s29 + $0x88] sm:$0xff] %v459_v40  ;;  %1239 = vst [vmem:[%s2485_s14 + $0x28] sm:$0xff] %v1151_v44  ;;  %v470_v9 = vadd.f32 2.0, %v2590_v63  ;;  %v471_v10 = vadd.f32 2.0, %v2593_v3  ;;  %v2605_v11 = vld [vmem:[%s2422_s16 + $0xf0] sm:$0xff]  ;;  %v2608_v12 = vld [vmem:[%s2422_s16 + $0xf8] sm:$0xff]  ;;  %v1157_v40 = vmul.f32 %v2482_v22, %v2482_v22 }
  0x65   : > { %548 = vst [vmem:[%s2467_s29 + $0x90] sm:$0xff] %v460_v45  ;;  %549 = vst [vmem:[%s2467_s29 + $0x98] sm:$0xff] %v461_v46  ;;  %v2611_v16 = vld [vmem:[%s2422_s16 + $0x100] sm:$0xff]  ;;  %v472_v18 = vadd.f32 2.0, %v2605_v11  ;;  %v473_v19 = vadd.f32 2.0, %v2608_v12  ;;  %v2623_v24 = vld [vmem:[%s2422_s16 + $0x108] sm:$0xff] }
  0x66   : > { %550 = vst [vmem:[%s2467_s29 + $0xa0] sm:$0xff] %v462_v47  ;;  %1240 = vst [vmem:[%s2485_s14 + $0x30] sm:$0xff] %v1152_v51  ;;  %v474_v23 = vadd.f32 2.0, %v2611_v16  ;;  %v2626_v25 = vld [vmem:[%s2422_s16 + $0x110] sm:$0xff]  ;;  %v2629_v26 = vld [vmem:[%s2422_s16 + $0x118] sm:$0xff]  ;;  %v475_v31 = vadd.f32 2.0, %v2623_v24 }
  0x67   : > { %551 = vst [vmem:[%s2467_s29 + $0xa8] sm:$0xff] %v463_v52  ;;  %552 = vst [vmem:[%s2467_s29 + $0xb0] sm:$0xff] %v464_v53  ;;  %v476_v32 = vadd.f32 2.0, %v2626_v25  ;;  %v477_v33 = vadd.f32 2.0, %v2629_v26  ;;  %v2641_v37 = vld [vmem:[%s2422_s16 + $0x120] sm:$0xff]  ;;  %v2644_v38 = vld [vmem:[%s2422_s16 + $0x128] sm:$0xff]  ;;  %v1158_v53 = vmul.f32 %v2497_v27, %v2497_v27 }
  0x68   : > { %553 = vst [vmem:[%s2467_s29 + $0xb8] sm:$0xff] %v465_v54  ;;  %1241 = vst [vmem:[%s2485_s14 + $0x38] sm:$0xff] %v1153_v58  ;;  %v2647_v39 = vld [vmem:[%s2422_s16 + $0x130] sm:$0xff]  ;;  %v478_v44 = vadd.f32 2.0, %v2641_v37  ;;  %v479_v45 = vadd.f32 2.0, %v2644_v38  ;;  %v2659_v47 = vld [vmem:[%s2422_s16 + $0x138] sm:$0xff] }
  0x69   : > { %554 = vst [vmem:[%s2467_s29 + $0xc0] sm:$0xff] %v466_v59  ;;  %555 = vst [vmem:[%s2467_s29 + $0xc8] sm:$0xff] %v467_v60  ;;  %v480_v46 = vadd.f32 2.0, %v2647_v39  ;;  %v2662_v51 = vld [vmem:[%s2422_s16 + $0x140] sm:$0xff]  ;;  %v2665_v52 = vld [vmem:[%s2422_s16 + $0x148] sm:$0xff]  ;;  %v481_v54 = vadd.f32 2.0, %v2659_v47 }
  0x6a   : > { %556 = vst [vmem:[%s2467_s29 + $0xd0] sm:$0xff] %v468_v61  ;;  %1242 = vst [vmem:[%s2485_s14 + $0x40] sm:$0xff] %v1154_v4  ;;  %v482_v58 = vadd.f32 2.0, %v2662_v51  ;;  %v483_v59 = vadd.f32 2.0, %v2665_v52  ;;  %v2677_v60 = vld [vmem:[%s2422_s16 + $0x150] sm:$0xff]  ;;  %v2680_v61 = vld [vmem:[%s2422_s16 + $0x158] sm:$0xff] }
  0x6b   : > { %557 = vst [vmem:[%s2467_s29 + $0xd8] sm:$0xff] %v469_v5  ;;  %558 = vst [vmem:[%s2467_s29 + $0xe0] sm:$0xff] %v470_v9  ;;  %v2683_v4 = vld [vmem:[%s2422_s16 + $0x160] sm:$0xff]  ;;  %v1159_v5 = vmul.f32 %v2500_v28, %v2500_v28  ;;  %v484_v9 = vadd.f32 2.0, %v2677_v60  ;;  %s3147_s9 = scalar_lea.vmem [#allocation8], %s2418_s13  ;;  %s3326_s27 = scalar_lea.vmem [#allocation9], %s2418_s13 }
  0x6c   : > { %559 = vst [vmem:[%s2467_s29 + $0xe8] sm:$0xff] %v471_v10  ;;  %1243 = vst [vmem:[%s2485_s14 + $0x48] sm:$0xff] %v1155_v17  ;;  %v485_v10 = vadd.f32 2.0, %v2680_v61  ;;  %v486_v17 = vadd.f32 2.0, %v2683_v4  ;;  %s4198_s28 = scalar_lea.sflag [#allocation4], %s2415_s11  ;;  %s3859_s25 = scalar_lea.sflag [#allocation7], %s1327_s12 }
  0x6d   : > { %560 = vst [vmem:[%s2467_s29 + $0xf0] sm:$0xff] %v472_v18  ;;  %561 = vst [vmem:[%s2467_s29 + $0xf8] sm:$0xff] %v473_v19  ;;  %v2695_v18 = vld [vmem:[%s2422_s16 + $0x168] sm:$0xff]  ;;  %v2698_v19 = vld [vmem:[%s2422_s16 + $0x170] sm:$0xff]  ;;  %s3863_s8 = scalar_lea.sflag [#allocation10], %s1327_s12  ;;  %s1350_s10 = smul.u32 (%p2356_p9), 22, %s2247_s21 }
  0x6e   : > { %562 = vst [vmem:[%s2467_s29 + $0x100] sm:$0xff] %v474_v23  ;;  %1244 = vst [vmem:[%s2485_s14 + $0x50] sm:$0xff] %v1156_v30  ;;  %v2701_v23 = vld [vmem:[%s2422_s16 + $0x178] sm:$0xff]  ;;  %v1160_v30 = vmul.f32 %v2503_v29, %v2503_v29 }
  0x6f   : > { %563 = vst [vmem:[%s2467_s29 + $0x108] sm:$0xff] %v475_v31  ;;  %564 = vst [vmem:[%s2467_s29 + $0x110] sm:$0xff] %v476_v32  ;;  %v487_v31 = vadd.f32 2.0, %v2695_v18  ;;  %v488_v32 = vadd.f32 2.0, %v2698_v19  ;;  %s1352_s13 = ssub.s32 (%p2356_p9), 64, %s1350_s10 }
  0x70   : > { %565 = vst [vmem:[%s2467_s29 + $0x118] sm:$0xff] %v477_v33  ;;  %4207 = vst [vmem:[#allocation18_spill] sm:$0xff] %v2677_v60  ;;  %v489_v33 = vadd.f32 2.0, %v2701_v23  ;;  %p1353_p8 = scmp.lt.s32.totalorder (%p2356_p9), %s1352_s13, 22 }
  0x71   : > { %4208 = vst [vmem:[#allocation19_spill] sm:$0xff] %v2680_v61  ;;  %4209 = vst [vmem:[#allocation20_spill] sm:$0xff] %v2683_v4 }
  0x72   : > { %1245 = vst [vmem:[%s2485_s14 + $0x58] sm:$0xff] %v1157_v40  ;;  %566 = vst [vmem:[%s2467_s29 + $0x120] sm:$0xff] %v478_v44  ;;  %v2713_v40 = vld [vmem:[%s2422_s16 + $0x180] sm:$0xff]  ;;  %v2716_v44 = vld [vmem:[%s2422_s16 + $0x188] sm:$0xff] }
  0x73   : > { %567 = vst [vmem:[%s2467_s29 + $0x128] sm:$0xff] %v479_v45  ;;  %568 = vst [vmem:[%s2467_s29 + $0x130] sm:$0xff] %v480_v46  ;;  %v2719_v45 = vld [vmem:[%s2422_s16 + $0x190] sm:$0xff]  ;;  %v1161_v46 = vmul.f32 %v2515_v34, %v2515_v34 }
  0x74   : > { %4210 = vst [vmem:[#allocation21_spill] sm:$0xff] %v2695_v18  ;;  %4211 = vst [vmem:[#allocation22_spill] sm:$0xff] %v2698_v19 }
  0x75   : > { %4212 = vst [vmem:[#allocation23_spill] sm:$0xff] %v2701_v23  ;;  %1246 = vst [vmem:[%s2485_s14 + $0x60] sm:$0xff] %v1158_v53  ;;  %v490_v53 = vadd.f32 2.0, %v2713_v40  ;;  %v2737_v23 = vld [vmem:[%s2422_s16 + $0x1a8] sm:$0xff] }
  0x76   : > { %569 = vst [vmem:[%s2467_s29 + $0x138] sm:$0xff] %v481_v54  ;;  %570 = vst [vmem:[%s2467_s29 + $0x140] sm:$0xff] %v482_v58  ;;  %v491_v54 = vadd.f32 2.0, %v2716_v44  ;;  %v492_v58 = vadd.f32 2.0, %v2719_v45 }
  0x77   : > { %571 = vst [vmem:[%s2467_s29 + $0x148] sm:$0xff] %v483_v59  ;;  %4213 = vst [vmem:[#allocation24_spill] sm:$0xff] %v2713_v40  ;;  %v2731_v59 = vld [vmem:[%s2422_s16 + $0x198] sm:$0xff]  ;;  %v2755_v40 = vld [vmem:[%s2422_s16 + $0x1c0] sm:$0xff] }
  0x78   : > { %4214 = vst [vmem:[#allocation25_spill] sm:$0xff] %v2716_v44  ;;  %4215 = vst [vmem:[#allocation26_spill] sm:$0xff] %v2719_v45  ;;  %v495_v45 = vadd.f32 2.0, %v2737_v23  ;;  %v2749_v44 = vld [vmem:[%s2422_s16 + $0x1b0] sm:$0xff] }
  0x79   : > { %1247 = vst [vmem:[%s2485_s14 + $0x68] sm:$0xff] %v1159_v5  ;;  %572 = vst [vmem:[%s2467_s29 + $0x150] sm:$0xff] %v484_v9  ;;  %v2734_v5 = vld [vmem:[%s2422_s16 + $0x1a0] sm:$0xff]  ;;  %v1162_v9 = vmul.f32 %v2518_v35, %v2518_v35 }
  0x7a   : > { %573 = vst [vmem:[%s2467_s29 + $0x158] sm:$0xff] %v485_v10  ;;  %574 = vst [vmem:[%s2467_s29 + $0x160] sm:$0xff] %v486_v17  ;;  %v493_v10 = vadd.f32 2.0, %v2731_v59  ;;  %v494_v17 = vadd.f32 2.0, %v2734_v5 }
  0x7b   : > { %4216 = vst [vmem:[#allocation27_spill] sm:$0xff] %v2731_v59  ;;  %4217 = vst [vmem:[#allocation28_spill] sm:$0xff] %v2734_v5  ;;  %v2767_v5 = vld [vmem:[%s2422_s16 + $0x1c8] sm:$0xff]  ;;  %v2773_v59 = vld [vmem:[%s2422_s16 + $0x1d8] sm:$0xff] }
  0x7c   : > { %4218 = vst [vmem:[#allocation29_spill] sm:$0xff] %v2737_v23  ;;  %1248 = vst [vmem:[%s2485_s14 + $0x70] sm:$0xff] %v1160_v30  ;;  %v2752_v30 = vld [vmem:[%s2422_s16 + $0x1b8] sm:$0xff]  ;;  %v498_v23 = vadd.f32 2.0, %v2755_v40 }
  0x7d   : > { %575 = vst [vmem:[%s2467_s29 + $0x168] sm:$0xff] %v487_v31  ;;  %576 = vst [vmem:[%s2467_s29 + $0x170] sm:$0xff] %v488_v32  ;;  %v1163_v31 = vmul.f32 %v2521_v36, %v2521_v36  ;;  %v496_v32 = vadd.f32 2.0, %v2749_v44 }
  0x7e   : > { %577 = vst [vmem:[%s2467_s29 + $0x178] sm:$0xff] %v489_v33  ;;  %4219 = vst [vmem:[#allocation30_spill] sm:$0xff] %v2749_v44  ;;  %v497_v33 = vadd.f32 2.0, %v2752_v30  ;;  %v2791_v44 = vld [vmem:[%s2422_s16 + $0x1f0] sm:$0xff] }
  0x7f   : > { %4220 = vst [vmem:[#allocation31_spill] sm:$0xff] %v2752_v30  ;;  %4221 = vst [vmem:[#allocation32_spill] sm:$0xff] %v2755_v40  ;;  %v501_v40 = vadd.f32 2.0, %v2773_v59  ;;  %v2785_v30 = vld [vmem:[%s2422_s16 + $0x1e0] sm:$0xff] }
  0x80   : > { %1249 = vst [vmem:[%s2485_s14 + $0x78] sm:$0xff] %v1161_v46  ;;  %578 = vst [vmem:[%s2467_s29 + $0x180] sm:$0xff] %v490_v53  ;;  %v2770_v46 = vld [vmem:[%s2422_s16 + $0x1d0] sm:$0xff]  ;;  %v1164_v53 = vmul.f32 %v2533_v41, %v2533_v41 }
  0x81   : > { %579 = vst [vmem:[%s2467_s29 + $0x188] sm:$0xff] %v491_v54  ;;  %580 = vst [vmem:[%s2467_s29 + $0x190] sm:$0xff] %v492_v58  ;;  %v499_v54 = vadd.f32 2.0, %v2767_v5  ;;  %v500_v58 = vadd.f32 2.0, %v2770_v46 }
  0x82   : > { %4222 = vst [vmem:[#allocation33_spill] sm:$0xff] %v2767_v5  ;;  %4223 = vst [vmem:[#allocation34_spill] sm:$0xff] %v2770_v46  ;;  %v2803_v46 = vld [vmem:[%s2422_s16 + $0x1f8] sm:$0xff]  ;;  %v2809_v5 = vld [vmem:[%s2422_s16 + $0x208] sm:$0xff] }
  0x83   : > { %4224 = vst [vmem:[#allocation35_spill] sm:$0xff] %v2773_v59  ;;  %1250 = vst [vmem:[%s2485_s14 + $0x80] sm:$0xff] %v1162_v9  ;;  %v2788_v9 = vld [vmem:[%s2422_s16 + $0x1e8] sm:$0xff]  ;;  %v504_v59 = vadd.f32 2.0, %v2791_v44 }
  0x84   : > { %581 = vst [vmem:[%s2467_s29 + $0x198] sm:$0xff] %v493_v10  ;;  %582 = vst [vmem:[%s2467_s29 + $0x1a0] sm:$0xff] %v494_v17  ;;  %v502_v10 = vadd.f32 2.0, %v2785_v30  ;;  %v503_v17 = vadd.f32 2.0, %v2788_v9 }
  0x85   : > { %583 = vst [vmem:[%s2467_s29 + $0x1a8] sm:$0xff] %v495_v45  ;;  %4225 = vst [vmem:[#allocation36_spill] sm:$0xff] %v2785_v30  ;;  %v1165_v45 = vmul.f32 %v2536_v42, %v2536_v42  ;;  %v2827_v30 = vld [vmem:[%s2422_s16 + $0x220] sm:$0xff] }
  0x86   : > { %4226 = vst [vmem:[#allocation37_spill] sm:$0xff] %v2788_v9  ;;  %4227 = vst [vmem:[#allocation38_spill] sm:$0xff] %v2791_v44  ;;  %v507_v44 = vadd.f32 2.0, %v2809_v5  ;;  %v2821_v9 = vld [vmem:[%s2422_s16 + $0x210] sm:$0xff] }
  0x87   : > { %1251 = vst [vmem:[%s2485_s14 + $0x88] sm:$0xff] %v1163_v31  ;;  %584 = vst [vmem:[%s2467_s29 + $0x1b0] sm:$0xff] %v496_v32  ;;  %v2806_v31 = vld [vmem:[%s2422_s16 + $0x200] sm:$0xff]  ;;  %v505_v32 = vadd.f32 2.0, %v2803_v46 }
  0x88   : > { %585 = vst [vmem:[%s2467_s29 + $0x1b8] sm:$0xff] %v497_v33  ;;  %586 = vst [vmem:[%s2467_s29 + $0x1c0] sm:$0xff] %v498_v23  ;;  %v1166_v23 = vmul.f32 %v2539_v43, %v2539_v43  ;;  %v506_v33 = vadd.f32 2.0, %v2806_v31 }
  0x89   : > { %4228 = vst [vmem:[#allocation39_spill] sm:$0xff] %v2803_v46  ;;  %4229 = vst [vmem:[#allocation40_spill] sm:$0xff] %v2806_v31  ;;  %v2839_v31 = vld [vmem:[%s2422_s16 + $0x228] sm:$0xff]  ;;  %v2845_v46 = vld [vmem:[%s2422_s16 + $0x238] sm:$0xff] }
  0x8a   : > { %4230 = vst [vmem:[#allocation41_spill] sm:$0xff] %v2809_v5  ;;  %1252 = vst [vmem:[%s2485_s14 + $0x90] sm:$0xff] %v1164_v53  ;;  %v2824_v53 = vld [vmem:[%s2422_s16 + $0x218] sm:$0xff]  ;;  %v510_v5 = vadd.f32 2.0, %v2827_v30 }
  0x8b   : > { %587 = vst [vmem:[%s2467_s29 + $0x1c8] sm:$0xff] %v499_v54  ;;  %588 = vst [vmem:[%s2467_s29 + $0x1d0] sm:$0xff] %v500_v58  ;;  %v508_v54 = vadd.f32 2.0, %v2821_v9  ;;  %v509_v58 = vadd.f32 2.0, %v2824_v53 }
  0x8c   : > { %589 = vst [vmem:[%s2467_s29 + $0x1d8] sm:$0xff] %v501_v40  ;;  %4231 = vst [vmem:[#allocation42_spill] sm:$0xff] %v2821_v9  ;;  %v1167_v40 = vmul.f32 %v2551_v48, %v2551_v48  ;;  %v2863_v9 = vld [vmem:[%s2422_s16 + $0x250] sm:$0xff] }
  0x8d   : > { %4232 = vst [vmem:[#allocation43_spill] sm:$0xff] %v2824_v53  ;;  %4233 = vst [vmem:[#allocation44_spill] sm:$0xff] %v2827_v30  ;;  %v513_v30 = vadd.f32 2.0, %v2845_v46  ;;  %v2857_v53 = vld [vmem:[%s2422_s16 + $0x240] sm:$0xff] }
  0x8e   : > { %1253 = vst [vmem:[%s2485_s14 + $0x98] sm:$0xff] %v1165_v45  ;;  %590 = vst [vmem:[%s2467_s29 + $0x1e0] sm:$0xff] %v502_v10  ;;  %v2842_v45 = vld [vmem:[%s2422_s16 + $0x230] sm:$0xff]  ;;  %v511_v10 = vadd.f32 2.0, %v2839_v31 }
  0x8f   : > { %591 = vst [vmem:[%s2467_s29 + $0x1e8] sm:$0xff] %v503_v17  ;;  %592 = vst [vmem:[%s2467_s29 + $0x1f0] sm:$0xff] %v504_v59  ;;  %v1168_v59 = vmul.f32 %v2554_v49, %v2554_v49  ;;  %v512_v17 = vadd.f32 2.0, %v2842_v45 }
  0x90   : > { %4234 = vst [vmem:[#allocation45_spill] sm:$0xff] %v2839_v31  ;;  %4235 = vst [vmem:[#allocation46_spill] sm:$0xff] %v2842_v45  ;;  %v2875_v45 = vld [vmem:[%s2422_s16 + $0x258] sm:$0xff]  ;;  %v2881_v31 = vld [vmem:[%s2422_s16 + $0x268] sm:$0xff] }
  0x91   : > { %4236 = vst [vmem:[#allocation47_spill] sm:$0xff] %v2845_v46  ;;  %1254 = vst [vmem:[%s2485_s14 + $0xa0] sm:$0xff] %v1166_v23  ;;  %v2860_v23 = vld [vmem:[%s2422_s16 + $0x248] sm:$0xff]  ;;  %v516_v46 = vadd.f32 2.0, %v2863_v9 }
  0x92   : > { %593 = vst [vmem:[%s2467_s29 + $0x1f8] sm:$0xff] %v505_v32  ;;  %594 = vst [vmem:[%s2467_s29 + $0x200] sm:$0xff] %v506_v33  ;;  %v514_v32 = vadd.f32 2.0, %v2857_v53  ;;  %v515_v33 = vadd.f32 2.0, %v2860_v23 }
  0x93   : > { %595 = vst [vmem:[%s2467_s29 + $0x208] sm:$0xff] %v507_v44  ;;  %4237 = vst [vmem:[#allocation48_spill] sm:$0xff] %v2857_v53  ;;  %v1169_v44 = vmul.f32 %v2557_v50, %v2557_v50  ;;  %v2899_v53 = vld [vmem:[%s2422_s16 + $0x280] sm:$0xff] }
  0x94   : > { %4238 = vst [vmem:[#allocation49_spill] sm:$0xff] %v2860_v23  ;;  %4239 = vst [vmem:[#allocation50_spill] sm:$0xff] %v2863_v9  ;;  %v519_v9 = vadd.f32 2.0, %v2881_v31  ;;  %v2893_v23 = vld [vmem:[%s2422_s16 + $0x270] sm:$0xff] }
  0x95   : > { %1255 = vst [vmem:[%s2485_s14 + $0xa8] sm:$0xff] %v1167_v40  ;;  %596 = vst [vmem:[%s2467_s29 + $0x210] sm:$0xff] %v508_v54  ;;  %v2878_v40 = vld [vmem:[%s2422_s16 + $0x260] sm:$0xff]  ;;  %v517_v54 = vadd.f32 2.0, %v2875_v45 }
  0x96   : > { %597 = vst [vmem:[%s2467_s29 + $0x218] sm:$0xff] %v509_v58  ;;  %598 = vst [vmem:[%s2467_s29 + $0x220] sm:$0xff] %v510_v5  ;;  %v1170_v5 = vmul.f32 %v2569_v55, %v2569_v55  ;;  %v518_v58 = vadd.f32 2.0, %v2878_v40 }
  0x97   : > { %4240 = vst [vmem:[#allocation51_spill] sm:$0xff] %v2875_v45  ;;  %4241 = vst [vmem:[#allocation52_spill] sm:$0xff] %v2878_v40  ;;  %v2911_v40 = vld [vmem:[%s2422_s16 + $0x288] sm:$0xff]  ;;  %v2917_v45 = vld [vmem:[%s2422_s16 + $0x298] sm:$0xff] }
  0x98   : > { %4242 = vst [vmem:[#allocation53_spill] sm:$0xff] %v2881_v31  ;;  %1256 = vst [vmem:[%s2485_s14 + $0xb0] sm:$0xff] %v1168_v59  ;;  %v2896_v59 = vld [vmem:[%s2422_s16 + $0x278] sm:$0xff]  ;;  %v522_v31 = vadd.f32 2.0, %v2899_v53 }
  0x99   : > { %599 = vst [vmem:[%s2467_s29 + $0x228] sm:$0xff] %v511_v10  ;;  %600 = vst [vmem:[%s2467_s29 + $0x230] sm:$0xff] %v512_v17  ;;  %v520_v10 = vadd.f32 2.0, %v2893_v23  ;;  %v521_v17 = vadd.f32 2.0, %v2896_v59 }
  0x9a   : > { %601 = vst [vmem:[%s2467_s29 + $0x238] sm:$0xff] %v513_v30  ;;  %4243 = vst [vmem:[#allocation54_spill] sm:$0xff] %v2893_v23  ;;  %v1171_v30 = vmul.f32 %v2572_v56, %v2572_v56  ;;  %v2935_v23 = vld [vmem:[%s2422_s16 + $0x2b0] sm:$0xff] }
  0x9b   : > { %4244 = vst [vmem:[#allocation55_spill] sm:$0xff] %v2896_v59  ;;  %4245 = vst [vmem:[#allocation56_spill] sm:$0xff] %v2899_v53  ;;  %v525_v53 = vadd.f32 2.0, %v2917_v45  ;;  %v2929_v59 = vld [vmem:[%s2422_s16 + $0x2a0] sm:$0xff] }
  0x9c   : > { %1257 = vst [vmem:[%s2485_s14 + $0xb8] sm:$0xff] %v1169_v44  ;;  %602 = vst [vmem:[%s2467_s29 + $0x240] sm:$0xff] %v514_v32  ;;  %v2914_v44 = vld [vmem:[%s2422_s16 + $0x290] sm:$0xff]  ;;  %v523_v32 = vadd.f32 2.0, %v2911_v40 }
  0x9d   : > { %603 = vst [vmem:[%s2467_s29 + $0x248] sm:$0xff] %v515_v33  ;;  %604 = vst [vmem:[%s2467_s29 + $0x250] sm:$0xff] %v516_v46  ;;  %v1172_v46 = vmul.f32 %v2575_v57, %v2575_v57  ;;  %v524_v33 = vadd.f32 2.0, %v2914_v44 }
  0x9e   : > { %4246 = vst [vmem:[#allocation57_spill] sm:$0xff] %v2911_v40  ;;  %4247 = vst [vmem:[#allocation58_spill] sm:$0xff] %v2914_v44  ;;  %v2947_v44 = vld [vmem:[%s2422_s16 + $0x2b8] sm:$0xff] }
  0x9f   : > { %4248 = vst [vmem:[#allocation59_spill] sm:$0xff] %v2917_v45  ;;  %1258 = vst [vmem:[%s2485_s14 + $0xc0] sm:$0xff] %v1170_v5  ;;  %v2932_v5 = vld [vmem:[%s2422_s16 + $0x2a8] sm:$0xff]  ;;  %v528_v45 = vadd.f32 2.0, %v2935_v23 }
  0xa0   : > { %605 = vst [vmem:[%s2467_s29 + $0x258] sm:$0xff] %v517_v54  ;;  %606 = vst [vmem:[%s2467_s29 + $0x260] sm:$0xff] %v518_v58  ;;  %v526_v54 = vadd.f32 2.0, %v2929_v59  ;;  %v527_v58 = vadd.f32 2.0, %v2932_v5 }
  0xa1   : > { %607 = vst [vmem:[%s2467_s29 + $0x268] sm:$0xff] %v519_v9  ;;  %4249 = vst [vmem:[#allocation60_spill] sm:$0xff] %v2932_v5  ;;  %v1173_v9 = vmul.f32 %v2587_v62, %v2587_v62  ;;  %v1706_v5 = vadd.f32 -2.0, %v2442_v6 }
  0xa2   : > { %4250 = vst [vmem:[#allocation61_spill] sm:$0xff] %v2935_v23  ;;  %1259 = vst [vmem:[%s2485_s14 + $0xc8] sm:$0xff] %v1171_v30  ;;  %v1703_v30 = vadd.f32 -2.0, %v2430_v0 }
  0xa3   : > { %608 = vst [vmem:[%s2467_s29 + $0x270] sm:$0xff] %v520_v10  ;;  %609 = vst [vmem:[%s2467_s29 + $0x278] sm:$0xff] %v521_v17  ;;  %v1704_v10 = vadd.f32 -2.0, %v2433_v1  ;;  %v1705_v17 = vadd.f32 -2.0, %v2436_v2 }
  0xa4   : > { %610 = vst [vmem:[%s2467_s29 + $0x280] sm:$0xff] %v522_v31  ;;  %1260 = vst [vmem:[%s2485_s14 + $0xd0] sm:$0xff] %v1172_v46  ;;  %v529_v31 = vadd.f32 2.0, %v2947_v44  ;;  %v1708_v46 = vadd.f32 -2.0, %v2448_v8 }
  0xa5   : > { %611 = vst [vmem:[%s2467_s29 + $0x288] sm:$0xff] %v523_v32  ;;  %612 = vst [vmem:[%s2467_s29 + $0x290] sm:$0xff] %v524_v33  ;;  %v1709_v32 = vadd.f32 -2.0, %v2456_v13  ;;  %v1710_v33 = vadd.f32 -2.0, %v2459_v14 }
  0xa6   : > { %613 = vst [vmem:[%s2467_s29 + $0x298] sm:$0xff] %v525_v53  ;;  %1261 = vst [vmem:[%s2485_s14 + $0xd8] sm:$0xff] %v1173_v9  ;;  %v1707_v53 = vadd.f32 -2.0, %v2445_v7  ;;  %v1712_v9 = vadd.f32 -2.0, %v2476_v20 }
  0xa7   : > { %614 = vst [vmem:[%s2467_s29 + $0x2a0] sm:$0xff] %v526_v54  ;;  %615 = vst [vmem:[%s2467_s29 + $0x2a8] sm:$0xff] %v527_v58  ;;  %v1713_v54 = vadd.f32 -2.0, %v2479_v21  ;;  %v1714_v58 = vadd.f32 -2.0, %v2482_v22 }
  0xa8   : > { %616 = vst [vmem:[%s2467_s29 + $0x2b0] sm:$0xff] %v528_v45  ;;  %706 = vst [vmem:[%s2963_s17] sm:$0xff] %v1703_v30  ;;  %v1711_v45 = vadd.f32 -2.0, %v2462_v15  ;;  %v1715_v30 = vadd.f32 -2.0, %v2497_v27 }
  0xa9   : > { %617 = vst [vmem:[%s2467_s29 + $0x2b8] sm:$0xff] %v529_v31  ;;  %707 = vst [vmem:[%s2963_s17 + $0x8] sm:$0xff] %v1704_v10  ;;  %v1717_v31 = vadd.f32 -2.0, %v2503_v29  ;;  %v1718_v10 = vadd.f32 -2.0, %v2515_v34 }
  0xaa   : > { %708 = vst [vmem:[%s2963_s17 + $0x10] sm:$0xff] %v1705_v17  ;;  %709 = vst [vmem:[%s2963_s17 + $0x18] sm:$0xff] %v1706_v5  ;;  %v1716_v5 = vadd.f32 -2.0, %v2500_v28  ;;  %v1719_v17 = vadd.f32 -2.0, %v2518_v35 }
  0xab   : > { %710 = vst [vmem:[%s2963_s17 + $0x20] sm:$0xff] %v1707_v53  ;;  %711 = vst [vmem:[%s2963_s17 + $0x28] sm:$0xff] %v1708_v46  ;;  %v1720_v53 = vadd.f32 -2.0, %v2521_v36  ;;  %v1721_v46 = vadd.f32 -2.0, %v2533_v41 }
  0xac   : > { %712 = vst [vmem:[%s2963_s17 + $0x30] sm:$0xff] %v1709_v32  ;;  %713 = vst [vmem:[%s2963_s17 + $0x38] sm:$0xff] %v1710_v33  ;;  %v1722_v32 = vadd.f32 -2.0, %v2536_v42  ;;  %v1723_v33 = vadd.f32 -2.0, %v2539_v43 }
  0xad   : > { %714 = vst [vmem:[%s2963_s17 + $0x40] sm:$0xff] %v1711_v45  ;;  %715 = vst [vmem:[%s2963_s17 + $0x48] sm:$0xff] %v1712_v9  ;;  %v1724_v45 = vadd.f32 -2.0, %v2551_v48  ;;  %v1725_v9 = vadd.f32 -2.0, %v2554_v49 }
  0xae   : > { %716 = vst [vmem:[%s2963_s17 + $0x50] sm:$0xff] %v1713_v54  ;;  %717 = vst [vmem:[%s2963_s17 + $0x58] sm:$0xff] %v1714_v58  ;;  %v1726_v54 = vadd.f32 -2.0, %v2557_v50  ;;  %v1727_v58 = vadd.f32 -2.0, %v2569_v55 }
  0xaf   : > { %718 = vst [vmem:[%s2963_s17 + $0x60] sm:$0xff] %v1715_v30  ;;  %719 = vst [vmem:[%s2963_s17 + $0x68] sm:$0xff] %v1716_v5  ;;  %v1728_v30 = vadd.f32 -2.0, %v2572_v56  ;;  %v1729_v5 = vadd.f32 -2.0, %v2575_v57 }
  0xb0   : > { %720 = vst [vmem:[%s2963_s17 + $0x70] sm:$0xff] %v1717_v31  ;;  %721 = vst [vmem:[%s2963_s17 + $0x78] sm:$0xff] %v1718_v10  ;;  %v1730_v31 = vadd.f32 -2.0, %v2587_v62  ;;  %v1731_v10 = vadd.f32 -2.0, %v2590_v63 }
  0xb1   : > { %722 = vst [vmem:[%s2963_s17 + $0x80] sm:$0xff] %v1719_v17  ;;  %723 = vst [vmem:[%s2963_s17 + $0x88] sm:$0xff] %v1720_v53  ;;  %v1732_v17 = vadd.f32 -2.0, %v2593_v3  ;;  %v1733_v53 = vadd.f32 -2.0, %v2605_v11 }
  0xb2   : > { %724 = vst [vmem:[%s2963_s17 + $0x90] sm:$0xff] %v1721_v46  ;;  %725 = vst [vmem:[%s2963_s17 + $0x98] sm:$0xff] %v1722_v32  ;;  %v1734_v46 = vadd.f32 -2.0, %v2608_v12  ;;  %v1735_v32 = vadd.f32 -2.0, %v2611_v16 }
  0xb3   : > { %726 = vst [vmem:[%s2963_s17 + $0xa0] sm:$0xff] %v1723_v33  ;;  %727 = vst [vmem:[%s2963_s17 + $0xa8] sm:$0xff] %v1724_v45  ;;  %v1736_v33 = vadd.f32 -2.0, %v2623_v24  ;;  %v1737_v45 = vadd.f32 -2.0, %v2626_v25 }
  0xb4   : > { %728 = vst [vmem:[%s2963_s17 + $0xb0] sm:$0xff] %v1725_v9  ;;  %729 = vst [vmem:[%s2963_s17 + $0xb8] sm:$0xff] %v1726_v54  ;;  %v1738_v9 = vadd.f32 -2.0, %v2629_v26  ;;  %v1739_v54 = vadd.f32 -2.0, %v2641_v37 }
  0xb5   : > { %730 = vst [vmem:[%s2963_s17 + $0xc0] sm:$0xff] %v1727_v58  ;;  %731 = vst [vmem:[%s2963_s17 + $0xc8] sm:$0xff] %v1728_v30  ;;  %v1740_v58 = vadd.f32 -2.0, %v2644_v38  ;;  %v1741_v30 = vadd.f32 -2.0, %v2647_v39 }
  0xb6   : > { %732 = vst [vmem:[%s2963_s17 + $0xd0] sm:$0xff] %v1729_v5  ;;  %733 = vst [vmem:[%s2963_s17 + $0xd8] sm:$0xff] %v1730_v31  ;;  %v1742_v5 = vadd.f32 -2.0, %v2659_v47  ;;  %v1743_v31 = vadd.f32 -2.0, %v2662_v51 }
  0xb7   : > { %734 = vst [vmem:[%s2963_s17 + $0xe0] sm:$0xff] %v1731_v10  ;;  %735 = vst [vmem:[%s2963_s17 + $0xe8] sm:$0xff] %v1732_v17  ;;  %v1744_v10 = vadd.f32 -2.0, %v2665_v52  ;;  %v1745_v17 = vadd.f32 -2.0, %v2677_v60  ;;  %v4255_v60 = vld [vmem:[#allocation27_spill] sm:$0xff] }
  0xb8   : > { %736 = vst [vmem:[%s2963_s17 + $0xf0] sm:$0xff] %v1733_v53  ;;  %737 = vst [vmem:[%s2963_s17 + $0xf8] sm:$0xff] %v1734_v46  ;;  %v1746_v53 = vadd.f32 -2.0, %v2680_v61  ;;  %v1747_v46 = vadd.f32 -2.0, %v2683_v4  ;;  %v4254_v61 = vld [vmem:[#allocation26_spill] sm:$0xff] }
  0xb9   : > { %738 = vst [vmem:[%s2963_s17 + $0x100] sm:$0xff] %v1735_v32  ;;  %739 = vst [vmem:[%s2963_s17 + $0x108] sm:$0xff] %v1736_v33  ;;  %v1748_v32 = vadd.f32 -2.0, %v2695_v18  ;;  %v1749_v33 = vadd.f32 -2.0, %v2698_v19  ;;  %v1753_v4 = vadd.f32 -2.0, %v4254_v61  ;;  %v1754_v18 = vadd.f32 -2.0, %v4255_v60 }
  0xba   : > { %740 = vst [vmem:[%s2963_s17 + $0x110] sm:$0xff] %v1737_v45  ;;  %741 = vst [vmem:[%s2963_s17 + $0x118] sm:$0xff] %v1738_v9  ;;  %v4251_v45 = vld [vmem:[#allocation23_spill] sm:$0xff]  ;;  %v4262_v60 = vld [vmem:[#allocation34_spill] sm:$0xff] }
  0xbb   : > { %742 = vst [vmem:[%s2963_s17 + $0x120] sm:$0xff] %v1739_v54  ;;  %743 = vst [vmem:[%s2963_s17 + $0x128] sm:$0xff] %v1740_v58  ;;  %v1750_v9 = vadd.f32 -2.0, %v4251_v45  ;;  %v4252_v54 = vld [vmem:[#allocation24_spill] sm:$0xff]  ;;  %v4258_v45 = vld [vmem:[#allocation30_spill] sm:$0xff] }
  0xbc   : > { %744 = vst [vmem:[%s2963_s17 + $0x130] sm:$0xff] %v1741_v30  ;;  %745 = vst [vmem:[%s2963_s17 + $0x138] sm:$0xff] %v1742_v5  ;;  %v1751_v58 = vadd.f32 -2.0, %v4252_v54  ;;  %v4253_v30 = vld [vmem:[#allocation25_spill] sm:$0xff]  ;;  %v1757_v54 = vadd.f32 -2.0, %v4258_v45  ;;  %v4259_v19 = vld [vmem:[#allocation31_spill] sm:$0xff] }
  0xbd   : > { %746 = vst [vmem:[%s2963_s17 + $0x140] sm:$0xff] %v1743_v31  ;;  %747 = vst [vmem:[%s2963_s17 + $0x148] sm:$0xff] %v1744_v10  ;;  %v1752_v5 = vadd.f32 -2.0, %v4253_v30  ;;  %v4256_v31 = vld [vmem:[#allocation28_spill] sm:$0xff]  ;;  %v1758_v30 = vadd.f32 -2.0, %v4259_v19  ;;  %v4263_v61 = vld [vmem:[#allocation35_spill] sm:$0xff] }
  0xbe   : > { %748 = vst [vmem:[%s2963_s17 + $0x150] sm:$0xff] %v1745_v17  ;;  %749 = vst [vmem:[%s2963_s17 + $0x158] sm:$0xff] %v1746_v53  ;;  %v1755_v10 = vadd.f32 -2.0, %v4256_v31  ;;  %v4257_v17 = vld [vmem:[#allocation29_spill] sm:$0xff]  ;;  %v1761_v31 = vadd.f32 -2.0, %v4262_v60  ;;  %v4266_v19 = vld [vmem:[#allocation38_spill] sm:$0xff] }
  0xbf   : > { %750 = vst [vmem:[%s2963_s17 + $0x160] sm:$0xff] %v1747_v46  ;;  %751 = vst [vmem:[%s2963_s17 + $0x168] sm:$0xff] %v1748_v32  ;;  %v1756_v53 = vadd.f32 -2.0, %v4257_v17  ;;  %v4260_v46 = vld [vmem:[#allocation32_spill] sm:$0xff]  ;;  %v1762_v17 = vadd.f32 -2.0, %v4263_v61  ;;  %v4267_v45 = vld [vmem:[#allocation39_spill] sm:$0xff] }
  0xc0   : > { %752 = vst [vmem:[%s2963_s17 + $0x170] sm:$0xff] %v1749_v33  ;;  %753 = vst [vmem:[%s2963_s17 + $0x178] sm:$0xff] %v1750_v9  ;;  %v1759_v32 = vadd.f32 -2.0, %v4260_v46  ;;  %v4261_v33 = vld [vmem:[#allocation33_spill] sm:$0xff]  ;;  %v1765_v46 = vadd.f32 -2.0, %v4266_v19  ;;  %v4270_v61 = vld [vmem:[#allocation42_spill] sm:$0xff] }
  0xc1   : > { %754 = vst [vmem:[%s2963_s17 + $0x180] sm:$0xff] %v1751_v58  ;;  %755 = vst [vmem:[%s2963_s17 + $0x188] sm:$0xff] %v1752_v5  ;;  %v1760_v9 = vadd.f32 -2.0, %v4261_v33  ;;  %v4264_v58 = vld [vmem:[#allocation36_spill] sm:$0xff]  ;;  %v1766_v33 = vadd.f32 -2.0, %v4267_v45  ;;  %v4271_v60 = vld [vmem:[#allocation43_spill] sm:$0xff] }
  0xc2   : > { %756 = vst [vmem:[%s2963_s17 + $0x190] sm:$0xff] %v1753_v4  ;;  %757 = vst [vmem:[%s2963_s17 + $0x198] sm:$0xff] %v1754_v18  ;;  %v1763_v4 = vadd.f32 -2.0, %v4264_v58  ;;  %v4265_v18 = vld [vmem:[#allocation37_spill] sm:$0xff]  ;;  %v1769_v58 = vadd.f32 -2.0, %v4270_v61  ;;  %v4274_v45 = vld [vmem:[#allocation46_spill] sm:$0xff] }
  0xc3   : > { %758 = vst [vmem:[%s2963_s17 + $0x1a0] sm:$0xff] %v1755_v10  ;;  %759 = vst [vmem:[%s2963_s17 + $0x1a8] sm:$0xff] %v1756_v53  ;;  %v1764_v5 = vadd.f32 -2.0, %v4265_v18  ;;  %v4268_v10 = vld [vmem:[#allocation40_spill] sm:$0xff]  ;;  %v1770_v18 = vadd.f32 -2.0, %v4271_v60  ;;  %v4275_v19 = vld [vmem:[#allocation47_spill] sm:$0xff] }
  0xc4   : > { %760 = vst [vmem:[%s2963_s17 + $0x1b0] sm:$0xff] %v1757_v54  ;;  %761 = vst [vmem:[%s2963_s17 + $0x1b8] sm:$0xff] %v1758_v30  ;;  %v1767_v54 = vadd.f32 -2.0, %v4268_v10  ;;  %v4269_v30 = vld [vmem:[#allocation41_spill] sm:$0xff]  ;;  %v1773_v10 = vadd.f32 -2.0, %v4274_v45  ;;  %v4278_v60 = vld [vmem:[#allocation50_spill] sm:$0xff] }
  0xc5   : > { %762 = vst [vmem:[%s2963_s17 + $0x1c0] sm:$0xff] %v1759_v32  ;;  %763 = vst [vmem:[%s2963_s17 + $0x1c8] sm:$0xff] %v1760_v9  ;;  %v1768_v53 = vadd.f32 -2.0, %v4269_v30  ;;  %v4272_v32 = vld [vmem:[#allocation44_spill] sm:$0xff]  ;;  %v1774_v30 = vadd.f32 -2.0, %v4275_v19  ;;  %v4279_v61 = vld [vmem:[#allocation51_spill] sm:$0xff] }
  0xc6   : > { %764 = vst [vmem:[%s2963_s17 + $0x1d0] sm:$0xff] %v1761_v31  ;;  %765 = vst [vmem:[%s2963_s17 + $0x1d8] sm:$0xff] %v1762_v17  ;;  %v1771_v31 = vadd.f32 -2.0, %v4272_v32  ;;  %v4273_v17 = vld [vmem:[#allocation45_spill] sm:$0xff]  ;;  %v1777_v32 = vadd.f32 -2.0, %v4278_v60  ;;  %v4282_v19 = vld [vmem:[#allocation54_spill] sm:$0xff] }
  0xc7   : > { %766 = vst [vmem:[%s2963_s17 + $0x1e0] sm:$0xff] %v1763_v4  ;;  %767 = vst [vmem:[%s2963_s17 + $0x1e8] sm:$0xff] %v1764_v5  ;;  %v1772_v9 = vadd.f32 -2.0, %v4273_v17  ;;  %v4276_v4 = vld [vmem:[#allocation48_spill] sm:$0xff]  ;;  %v1778_v17 = vadd.f32 -2.0, %v4279_v61  ;;  %v4283_v45 = vld [vmem:[#allocation55_spill] sm:$0xff] }
  0xc8   : > { %768 = vst [vmem:[%s2963_s17 + $0x1f0] sm:$0xff] %v1765_v46  ;;  %769 = vst [vmem:[%s2963_s17 + $0x1f8] sm:$0xff] %v1766_v33  ;;  %v1775_v46 = vadd.f32 -2.0, %v4276_v4  ;;  %v4277_v33 = vld [vmem:[#allocation49_spill] sm:$0xff]  ;;  %v1781_v4 = vadd.f32 -2.0, %v4282_v19  ;;  %v4286_v61 = vld [vmem:[#allocation59_spill] sm:$0xff] }
  0xc9   : > { %770 = vst [vmem:[%s2963_s17 + $0x200] sm:$0xff] %v1767_v54  ;;  %771 = vst [vmem:[%s2963_s17 + $0x208] sm:$0xff] %v1768_v53  ;;  %v1776_v5 = vadd.f32 -2.0, %v4277_v33  ;;  %v4280_v54 = vld [vmem:[#allocation52_spill] sm:$0xff]  ;;  %v1782_v33 = vadd.f32 -2.0, %v4283_v45 }
  0xca   : > { %772 = vst [vmem:[%s2963_s17 + $0x210] sm:$0xff] %v1769_v58  ;;  %773 = vst [vmem:[%s2963_s17 + $0x218] sm:$0xff] %v1770_v18  ;;  %v1779_v58 = vadd.f32 -2.0, %v4280_v54  ;;  %v4281_v18 = vld [vmem:[#allocation53_spill] sm:$0xff] }
  0xcb   : > { %774 = vst [vmem:[%s2963_s17 + $0x220] sm:$0xff] %v1771_v31  ;;  %775 = vst [vmem:[%s2963_s17 + $0x228] sm:$0xff] %v1772_v9  ;;  %v1780_v53 = vadd.f32 -2.0, %v4281_v18  ;;  %v4284_v31 = vld [vmem:[#allocation56_spill] sm:$0xff]  ;;  %v4285_v9 = vld [vmem:[#allocation58_spill] sm:$0xff]  ;;  %v1786_v18 = vadd.f32 -2.0, %v4286_v61 }
  0xcc   : > { %776 = vst [vmem:[%s2963_s17 + $0x230] sm:$0xff] %v1773_v10  ;;  %777 = vst [vmem:[%s2963_s17 + $0x238] sm:$0xff] %v1774_v30  ;;  %v1783_v10 = vadd.f32 -2.0, %v4284_v31  ;;  %v1784_v30 = vadd.f32 -2.0, %v2911_v40  ;;  %v1785_v54 = vadd.f32 -2.0, %v4285_v9  ;;  %v1790_v40 = vadd.f32 -2.0, %v2947_v44 }
  0xcd   : > { %778 = vst [vmem:[%s2963_s17 + $0x240] sm:$0xff] %v1775_v46  ;;  %779 = vst [vmem:[%s2963_s17 + $0x248] sm:$0xff] %v1776_v5  ;;  %v1789_v5 = vadd.f32 -2.0, %v2935_v23  ;;  %v798_v23 = vmul.f32 2.0, %v2445_v7  ;;  %v806_v7 = vmul.f32 2.0, %v2497_v27  ;;  %v814_v27 = vmul.f32 2.0, %v2539_v43 }
  0xce   : > { %780 = vst [vmem:[%s2963_s17 + $0x250] sm:$0xff] %v1777_v32  ;;  %781 = vst [vmem:[%s2963_s17 + $0x258] sm:$0xff] %v1778_v17  ;;  %v1787_v32 = vadd.f32 -2.0, %v2929_v59  ;;  %v4287_v17 = vld [vmem:[#allocation60_spill] sm:$0xff]  ;;  %v822_v43 = vmul.f32 2.0, %v2590_v63  ;;  %v830_v63 = vmul.f32 2.0, %v2641_v37 }
  0xcf   : > { %782 = vst [vmem:[%s2963_s17 + $0x260] sm:$0xff] %v1779_v58  ;;  %783 = vst [vmem:[%s2963_s17 + $0x268] sm:$0xff] %v1780_v53  ;;  %v1788_v46 = vadd.f32 -2.0, %v4287_v17  ;;  %v794_v58 = vmul.f32 2.0, %v2430_v0  ;;  %v797_v53 = vmul.f32 2.0, %v2442_v6  ;;  %v802_v0 = vmul.f32 2.0, %v2462_v15 }
  0xd0   : > { %784 = vst [vmem:[%s2963_s17 + $0x270] sm:$0xff] %v1781_v4  ;;  %785 = vst [vmem:[%s2963_s17 + $0x278] sm:$0xff] %v1782_v33  ;;  %v795_v4 = vmul.f32 2.0, %v2433_v1  ;;  %v796_v33 = vmul.f32 2.0, %v2436_v2  ;;  %v803_v1 = vmul.f32 2.0, %v2476_v20  ;;  %v804_v2 = vmul.f32 2.0, %v2479_v21 }
  0xd1   : > { %786 = vst [vmem:[%s2963_s17 + $0x280] sm:$0xff] %v1783_v10  ;;  %787 = vst [vmem:[%s2963_s17 + $0x288] sm:$0xff] %v1784_v30  ;;  %v799_v10 = vmul.f32 2.0, %v2448_v8  ;;  %v800_v30 = vmul.f32 2.0, %v2456_v13  ;;  %v805_v6 = vmul.f32 2.0, %v2482_v22  ;;  %v807_v8 = vmul.f32 2.0, %v2500_v28 }
  0xd2   : > { %788 = vst [vmem:[%s2963_s17 + $0x290] sm:$0xff] %v1785_v54  ;;  %789 = vst [vmem:[%s2963_s17 + $0x298] sm:$0xff] %v1786_v18  ;;  %v801_v54 = vmul.f32 2.0, %v2459_v14  ;;  %v808_v13 = vmul.f32 2.0, %v2503_v29  ;;  %v809_v14 = vmul.f32 2.0, %v2515_v34  ;;  %v810_v15 = vmul.f32 2.0, %v2518_v35 }
  0xd3   : > { %790 = vst [vmem:[%s2963_s17 + $0x2a0] sm:$0xff] %v1787_v32  ;;  %791 = vst [vmem:[%s2963_s17 + $0x2a8] sm:$0xff] %v1788_v46  ;;  %v811_v20 = vmul.f32 2.0, %v2521_v36  ;;  %v812_v21 = vmul.f32 2.0, %v2533_v41  ;;  %v813_v22 = vmul.f32 2.0, %v2536_v42  ;;  %v815_v28 = vmul.f32 2.0, %v2551_v48 }
  0xd4   : > { %792 = vst [vmem:[%s2963_s17 + $0x2b0] sm:$0xff] %v1789_v5  ;;  %793 = vst [vmem:[%s2963_s17 + $0x2b8] sm:$0xff] %v1790_v40  ;;  %v816_v29 = vmul.f32 2.0, %v2554_v49  ;;  %v817_v34 = vmul.f32 2.0, %v2557_v50  ;;  %v818_v35 = vmul.f32 2.0, %v2569_v55  ;;  %v819_v36 = vmul.f32 2.0, %v2572_v56 }
  0xd5   : > { %882 = vst [vmem:[%s3147_s9] sm:$0xff] %v794_v58  ;;  %883 = vst [vmem:[%s3147_s9 + $0x8] sm:$0xff] %v795_v4  ;;  %v820_v41 = vmul.f32 2.0, %v2575_v57  ;;  %v821_v42 = vmul.f32 2.0, %v2587_v62  ;;  %v823_v48 = vmul.f32 2.0, %v2593_v3  ;;  %v824_v49 = vmul.f32 2.0, %v2605_v11  ;;  %v4289_v37 = vld [vmem:[#allocation19_spill] sm:$0xff] }
  0xd6   : > { %884 = vst [vmem:[%s3147_s9 + $0x10] sm:$0xff] %v796_v33  ;;  %885 = vst [vmem:[%s3147_s9 + $0x18] sm:$0xff] %v797_v53  ;;  %v825_v50 = vmul.f32 2.0, %v2608_v12  ;;  %v826_v55 = vmul.f32 2.0, %v2611_v16  ;;  %v827_v56 = vmul.f32 2.0, %v2623_v24  ;;  %v828_v57 = vmul.f32 2.0, %v2626_v25 }
  0xd7   : > { %886 = vst [vmem:[%s3147_s9 + $0x20] sm:$0xff] %v798_v23  ;;  %887 = vst [vmem:[%s3147_s9 + $0x28] sm:$0xff] %v799_v10  ;;  %v829_v62 = vmul.f32 2.0, %v2629_v26  ;;  %v831_v3 = vmul.f32 2.0, %v2644_v38  ;;  %v832_v11 = vmul.f32 2.0, %v2647_v39  ;;  %v833_v12 = vmul.f32 2.0, %v2659_v47 }
  0xd8   : > { %888 = vst [vmem:[%s3147_s9 + $0x30] sm:$0xff] %v800_v30  ;;  %889 = vst [vmem:[%s3147_s9 + $0x38] sm:$0xff] %v801_v54  ;;  %v834_v16 = vmul.f32 2.0, %v2662_v51  ;;  %v835_v24 = vmul.f32 2.0, %v2665_v52  ;;  %v4288_v25 = vld [vmem:[#allocation18_spill] sm:$0xff]  ;;  %v837_v38 = vmul.f32 2.0, %v4289_v37 }
  0xd9   : > { %890 = vst [vmem:[%s3147_s9 + $0x40] sm:$0xff] %v802_v0  ;;  %891 = vst [vmem:[%s3147_s9 + $0x48] sm:$0xff] %v803_v1  ;;  %v836_v26 = vmul.f32 2.0, %v4288_v25  ;;  %v4290_v39 = vld [vmem:[#allocation20_spill] sm:$0xff]  ;;  %v4291_v23 = vld [vmem:[#allocation21_spill] sm:$0xff] }
  0xda   : > { %892 = vst [vmem:[%s3147_s9 + $0x50] sm:$0xff] %v804_v2  ;;  %893 = vst [vmem:[%s3147_s9 + $0x58] sm:$0xff] %v805_v6  ;;  %v838_v47 = vmul.f32 2.0, %v4290_v39  ;;  %v839_v40 = vmul.f32 2.0, %v4291_v23  ;;  %v4292_v18 = vld [vmem:[#allocation22_spill] sm:$0xff]  ;;  %v4293_v32 = vld [vmem:[#allocation23_spill] sm:$0xff] }
  0xdb   : > { %894 = vst [vmem:[%s3147_s9 + $0x60] sm:$0xff] %v806_v7  ;;  %895 = vst [vmem:[%s3147_s9 + $0x68] sm:$0xff] %v807_v8  ;;  %v840_v51 = vmul.f32 2.0, %v4292_v18  ;;  %v841_v52 = vmul.f32 2.0, %v4293_v32  ;;  %v4294_v46 = vld [vmem:[#allocation24_spill] sm:$0xff]  ;;  %v4295_v58 = vld [vmem:[#allocation25_spill] sm:$0xff] }
  0xdc   : > { %896 = vst [vmem:[%s3147_s9 + $0x70] sm:$0xff] %v808_v13  ;;  %897 = vst [vmem:[%s3147_s9 + $0x78] sm:$0xff] %v809_v14  ;;  %v842_v5 = vmul.f32 2.0, %v4294_v46  ;;  %v843_v4 = vmul.f32 2.0, %v4295_v58  ;;  %v4296_v33 = vld [vmem:[#allocation26_spill] sm:$0xff]  ;;  %v4297_v10 = vld [vmem:[#allocation27_spill] sm:$0xff] }
  0xdd   : > { %898 = vst [vmem:[%s3147_s9 + $0x80] sm:$0xff] %v810_v15  ;;  %899 = vst [vmem:[%s3147_s9 + $0x88] sm:$0xff] %v811_v20  ;;  %v844_v53 = vmul.f32 2.0, %v4296_v33  ;;  %v845_v30 = vmul.f32 2.0, %v4297_v10  ;;  %v4298_v54 = vld [vmem:[#allocation28_spill] sm:$0xff]  ;;  %v4299_v1 = vld [vmem:[#allocation29_spill] sm:$0xff] }
  0xde   : > { %900 = vst [vmem:[%s3147_s9 + $0x90] sm:$0xff] %v812_v21  ;;  %901 = vst [vmem:[%s3147_s9 + $0x98] sm:$0xff] %v813_v22  ;;  %v846_v0 = vmul.f32 2.0, %v4298_v54  ;;  %v847_v2 = vmul.f32 2.0, %v4299_v1  ;;  %v4300_v6 = vld [vmem:[#allocation30_spill] sm:$0xff]  ;;  %v4301_v8 = vld [vmem:[#allocation31_spill] sm:$0xff] }
  0xdf   : > { %902 = vst [vmem:[%s3147_s9 + $0xa0] sm:$0xff] %v814_v27  ;;  %903 = vst [vmem:[%s3147_s9 + $0xa8] sm:$0xff] %v815_v28  ;;  %v848_v7 = vmul.f32 2.0, %v4300_v6  ;;  %v849_v13 = vmul.f32 2.0, %v4301_v8  ;;  %v4302_v14 = vld [vmem:[#allocation32_spill] sm:$0xff]  ;;  %v4303_v20 = vld [vmem:[#allocation33_spill] sm:$0xff] }
  0xe0   : > { %904 = vst [vmem:[%s3147_s9 + $0xb0] sm:$0xff] %v816_v29  ;;  %905 = vst [vmem:[%s3147_s9 + $0xb8] sm:$0xff] %v817_v34  ;;  %v850_v15 = vmul.f32 2.0, %v4302_v14  ;;  %v851_v21 = vmul.f32 2.0, %v4303_v20  ;;  %v4304_v22 = vld [vmem:[#allocation34_spill] sm:$0xff]  ;;  %v4305_v28 = vld [vmem:[#allocation35_spill] sm:$0xff] }
  0xe1   : > { %906 = vst [vmem:[%s3147_s9 + $0xc0] sm:$0xff] %v818_v35  ;;  %907 = vst [vmem:[%s3147_s9 + $0xc8] sm:$0xff] %v819_v36  ;;  %v852_v27 = vmul.f32 2.0, %v4304_v22  ;;  %v853_v29 = vmul.f32 2.0, %v4305_v28  ;;  %v4306_v34 = vld [vmem:[#allocation36_spill] sm:$0xff]  ;;  %v4307_v36 = vld [vmem:[#allocation37_spill] sm:$0xff] }
  0xe2   : > { %908 = vst [vmem:[%s3147_s9 + $0xd0] sm:$0xff] %v820_v41  ;;  %909 = vst [vmem:[%s3147_s9 + $0xd8] sm:$0xff] %v821_v42  ;;  %v854_v35 = vmul.f32 2.0, %v4306_v34  ;;  %v855_v41 = vmul.f32 2.0, %v4307_v36  ;;  %v4308_v42 = vld [vmem:[#allocation38_spill] sm:$0xff]  ;;  %v4320_v32 = vld [vmem:[#allocation51_spill] sm:$0xff] }
  0xe3   : > { %910 = vst [vmem:[%s3147_s9 + $0xe0] sm:$0xff] %v822_v43  ;;  %911 = vst [vmem:[%s3147_s9 + $0xe8] sm:$0xff] %v823_v48  ;;  %v856_v43 = vmul.f32 2.0, %v4308_v42  ;;  %v4309_v48 = vld [vmem:[#allocation39_spill] sm:$0xff]  ;;  %v4321_v46 = vld [vmem:[#allocation52_spill] sm:$0xff]  ;;  %v872_v33 = vmul.f32 2.0, %v4282_v19 }
  0xe4   : > { %912 = vst [vmem:[%s3147_s9 + $0xf0] sm:$0xff] %v824_v49  ;;  %913 = vst [vmem:[%s3147_s9 + $0xf8] sm:$0xff] %v825_v50  ;;  %v857_v49 = vmul.f32 2.0, %v4309_v48  ;;  %v4310_v50 = vld [vmem:[#allocation40_spill] sm:$0xff]  ;;  %v4322_v58 = vld [vmem:[#allocation53_spill] sm:$0xff]  ;;  %v876_v54 = vmul.f32 2.0, %v4285_v9 }
  0xe5   : > { %914 = vst [vmem:[%s3147_s9 + $0x100] sm:$0xff] %v826_v55  ;;  %915 = vst [vmem:[%s3147_s9 + $0x108] sm:$0xff] %v827_v56  ;;  %v858_v55 = vmul.f32 2.0, %v4310_v50  ;;  %v4311_v56 = vld [vmem:[#allocation41_spill] sm:$0xff]  ;;  %v877_v19 = vmul.f32 2.0, %v4286_v61  ;;  %v881_v9 = vmul.f32 2.0, %v2947_v44 }
  0xe6   : > { %916 = vst [vmem:[%s3147_s9 + $0x110] sm:$0xff] %v828_v57  ;;  %917 = vst [vmem:[%s3147_s9 + $0x118] sm:$0xff] %v829_v62  ;;  %v859_v57 = vmul.f32 2.0, %v4311_v56  ;;  %v4312_v62 = vld [vmem:[#allocation42_spill] sm:$0xff]  ;;  %v4323_v10 = vld [vmem:[#allocation57_spill] sm:$0xff] }
  0xe7   : > { %918 = vst [vmem:[%s3147_s9 + $0x120] sm:$0xff] %v830_v63  ;;  %919 = vst [vmem:[%s3147_s9 + $0x128] sm:$0xff] %v831_v3  ;;  %v860_v63 = vmul.f32 2.0, %v4312_v62  ;;  %v4313_v3 = vld [vmem:[#allocation43_spill] sm:$0xff]  ;;  %v1937_v61 = vld [vmem:[%s2422_s16] sm:$0xff] }
  0xe8   : > { %920 = vst [vmem:[%s3147_s9 + $0x130] sm:$0xff] %v832_v11  ;;  %921 = vst [vmem:[%s3147_s9 + $0x138] sm:$0xff] %v833_v12  ;;  %v861_v11 = vmul.f32 2.0, %v4313_v3  ;;  %v4314_v12 = vld [vmem:[#allocation44_spill] sm:$0xff]  ;;  %v1940_v8 = vld [vmem:[%s2422_s16 + $0x18] sm:$0xff] }
  0xe9   : > { %922 = vst [vmem:[%s3147_s9 + $0x140] sm:$0xff] %v834_v16  ;;  %923 = vst [vmem:[%s3147_s9 + $0x148] sm:$0xff] %v835_v24  ;;  %v862_v16 = vmul.f32 2.0, %v4314_v12  ;;  %v4315_v24 = vld [vmem:[#allocation45_spill] sm:$0xff]  ;;  %v1941_v44 = vld [vmem:[%s2422_s16 + $0x20] sm:$0xff] }
  0xea   : > { %924 = vst [vmem:[%s3147_s9 + $0x150] sm:$0xff] %v836_v26  ;;  %925 = vst [vmem:[%s3147_s9 + $0x158] sm:$0xff] %v837_v38  ;;  %v863_v25 = vmul.f32 2.0, %v4315_v24  ;;  %v4316_v26 = vld [vmem:[#allocation46_spill] sm:$0xff]  ;;  %v4317_v38 = vld [vmem:[#allocation47_spill] sm:$0xff]  ;;  %v974_v14 = vmul.f32 0.5, %v1941_v44 }
  0xeb   : > { %926 = vst [vmem:[%s3147_s9 + $0x160] sm:$0xff] %v838_v47  ;;  %927 = vst [vmem:[%s3147_s9 + $0x168] sm:$0xff] %v839_v40  ;;  %v864_v37 = vmul.f32 2.0, %v4316_v26  ;;  %v865_v39 = vmul.f32 2.0, %v4317_v38  ;;  %v4318_v47 = vld [vmem:[#allocation48_spill] sm:$0xff]  ;;  %v4319_v40 = vld [vmem:[#allocation49_spill] sm:$0xff] }
  0xec   : > { %928 = vst [vmem:[%s3147_s9 + $0x170] sm:$0xff] %v840_v51  ;;  %929 = vst [vmem:[%s3147_s9 + $0x178] sm:$0xff] %v841_v52  ;;  %v866_v23 = vmul.f32 2.0, %v4318_v47  ;;  %v867_v18 = vmul.f32 2.0, %v4319_v40  ;;  %v868_v51 = vmul.f32 2.0, %v4278_v60  ;;  %v869_v52 = vmul.f32 2.0, %v4320_v32 }
  0xed   : > { %930 = vst [vmem:[%s3147_s9 + $0x180] sm:$0xff] %v842_v5  ;;  %931 = vst [vmem:[%s3147_s9 + $0x188] sm:$0xff] %v843_v4  ;;  %v870_v5 = vmul.f32 2.0, %v4321_v46  ;;  %v871_v4 = vmul.f32 2.0, %v4322_v58  ;;  %v874_v60 = vmul.f32 2.0, %v4284_v31  ;;  %v4324_v31 = vld [vmem:[#allocation61_spill] sm:$0xff] }
  0xee   : > { %932 = vst [vmem:[%s3147_s9 + $0x190] sm:$0xff] %v844_v53  ;;  %933 = vst [vmem:[%s3147_s9 + $0x198] sm:$0xff] %v845_v30  ;;  %v873_v53 = vmul.f32 2.0, %v4283_v45  ;;  %v875_v30 = vmul.f32 2.0, %v4323_v10  ;;  %v878_v45 = vmul.f32 2.0, %v2929_v59  ;;  %v880_v1 = vmul.f32 2.0, %v4324_v31 }
  0xef   : > { %934 = vst [vmem:[%s3147_s9 + $0x1a0] sm:$0xff] %v846_v0  ;;  %935 = vst [vmem:[%s3147_s9 + $0x1a8] sm:$0xff] %v847_v2  ;;  %v879_v0 = vmul.f32 2.0, %v4287_v17  ;;  %v970_v2 = vmul.f32 0.5, %v1937_v61  ;;  %v1938_v59 = vld [vmem:[%s2422_s16 + $0x8] sm:$0xff]  ;;  %v1939_v17 = vld [vmem:[%s2422_s16 + $0x10] sm:$0xff] }
  0xf0   : > { %936 = vst [vmem:[%s3147_s9 + $0x1b0] sm:$0xff] %v848_v7  ;;  %937 = vst [vmem:[%s3147_s9 + $0x1b8] sm:$0xff] %v849_v13  ;;  %v971_v6 = vmul.f32 0.5, %v1938_v59  ;;  %v972_v7 = vmul.f32 0.5, %v1939_v17  ;;  %v973_v13 = vmul.f32 0.5, %v1940_v8  ;;  %v1960_v32 = vld [vmem:[%s2422_s16 + $0xb8] sm:$0xff] }
  0xf1   : > { %938 = vst [vmem:[%s3147_s9 + $0x1c0] sm:$0xff] %v850_v15  ;;  %939 = vst [vmem:[%s3147_s9 + $0x1c8] sm:$0xff] %v851_v21  ;;  %v1942_v15 = vld [vmem:[%s2422_s16 + $0x28] sm:$0xff]  ;;  %v1943_v21 = vld [vmem:[%s2422_s16 + $0x30] sm:$0xff] }
  0xf2   : > { %940 = vst [vmem:[%s3147_s9 + $0x1d0] sm:$0xff] %v852_v27  ;;  %941 = vst [vmem:[%s3147_s9 + $0x1d8] sm:$0xff] %v853_v29  ;;  %v975_v20 = vmul.f32 0.5, %v1942_v15  ;;  %v976_v22 = vmul.f32 0.5, %v1943_v21  ;;  %v1944_v27 = vld [vmem:[%s2422_s16 + $0x38] sm:$0xff]  ;;  %v1945_v29 = vld [vmem:[%s2422_s16 + $0x40] sm:$0xff] }
  0xf3   : > { %942 = vst [vmem:[%s3147_s9 + $0x1e0] sm:$0xff] %v854_v35  ;;  %943 = vst [vmem:[%s3147_s9 + $0x1e8] sm:$0xff] %v855_v41  ;;  %v977_v28 = vmul.f32 0.5, %v1944_v27  ;;  %v978_v34 = vmul.f32 0.5, %v1945_v29  ;;  %v1946_v35 = vld [vmem:[%s2422_s16 + $0x48] sm:$0xff]  ;;  %v1947_v41 = vld [vmem:[%s2422_s16 + $0x50] sm:$0xff] }
  0xf4   : > { %944 = vst [vmem:[%s3147_s9 + $0x1f0] sm:$0xff] %v856_v43  ;;  %945 = vst [vmem:[%s3147_s9 + $0x1f8] sm:$0xff] %v857_v49  ;;  %v979_v36 = vmul.f32 0.5, %v1946_v35  ;;  %v980_v42 = vmul.f32 0.5, %v1947_v41  ;;  %v1948_v43 = vld [vmem:[%s2422_s16 + $0x58] sm:$0xff]  ;;  %v1949_v49 = vld [vmem:[%s2422_s16 + $0x60] sm:$0xff] }
  0xf5   : > { %946 = vst [vmem:[%s3147_s9 + $0x200] sm:$0xff] %v858_v55  ;;  %947 = vst [vmem:[%s3147_s9 + $0x208] sm:$0xff] %v859_v57  ;;  %v981_v48 = vmul.f32 0.5, %v1948_v43  ;;  %v982_v50 = vmul.f32 0.5, %v1949_v49  ;;  %v1950_v55 = vld [vmem:[%s2422_s16 + $0x68] sm:$0xff]  ;;  %v1951_v57 = vld [vmem:[%s2422_s16 + $0x70] sm:$0xff] }
  0xf6   : > { %948 = vst [vmem:[%s3147_s9 + $0x210] sm:$0xff] %v860_v63  ;;  %949 = vst [vmem:[%s3147_s9 + $0x218] sm:$0xff] %v861_v11  ;;  %v983_v56 = vmul.f32 0.5, %v1950_v55  ;;  %v984_v62 = vmul.f32 0.5, %v1951_v57  ;;  %v1952_v63 = vld [vmem:[%s2422_s16 + $0x78] sm:$0xff]  ;;  %v1953_v11 = vld [vmem:[%s2422_s16 + $0x80] sm:$0xff] }
  0xf7   : > { %950 = vst [vmem:[%s3147_s9 + $0x220] sm:$0xff] %v862_v16  ;;  %951 = vst [vmem:[%s3147_s9 + $0x228] sm:$0xff] %v863_v25  ;;  %v985_v3 = vmul.f32 0.5, %v1952_v63  ;;  %v986_v12 = vmul.f32 0.5, %v1953_v11  ;;  %v1954_v16 = vld [vmem:[%s2422_s16 + $0x88] sm:$0xff]  ;;  %v1955_v25 = vld [vmem:[%s2422_s16 + $0x90] sm:$0xff] }
  0xf8   : > { %952 = vst [vmem:[%s3147_s9 + $0x230] sm:$0xff] %v864_v37  ;;  %953 = vst [vmem:[%s3147_s9 + $0x238] sm:$0xff] %v865_v39  ;;  %v987_v24 = vmul.f32 0.5, %v1954_v16  ;;  %v988_v26 = vmul.f32 0.5, %v1955_v25  ;;  %v1956_v37 = vld [vmem:[%s2422_s16 + $0x98] sm:$0xff]  ;;  %v1957_v39 = vld [vmem:[%s2422_s16 + $0xa0] sm:$0xff] }
  0xf9   : > { %954 = vst [vmem:[%s3147_s9 + $0x240] sm:$0xff] %v866_v23  ;;  %955 = vst [vmem:[%s3147_s9 + $0x248] sm:$0xff] %v867_v18  ;;  %v989_v38 = vmul.f32 0.5, %v1956_v37  ;;  %v990_v47 = vmul.f32 0.5, %v1957_v39  ;;  %v1958_v23 = vld [vmem:[%s2422_s16 + $0xa8] sm:$0xff]  ;;  %v1959_v18 = vld [vmem:[%s2422_s16 + $0xb0] sm:$0xff] }
  0xfa   : > { %956 = vst [vmem:[%s3147_s9 + $0x250] sm:$0xff] %v868_v51  ;;  %957 = vst [vmem:[%s3147_s9 + $0x258] sm:$0xff] %v869_v52  ;;  %v991_v40 = vmul.f32 0.5, %v1958_v23  ;;  %v992_v51 = vmul.f32 0.5, %v1959_v18  ;;  %v993_v52 = vmul.f32 0.5, %v1960_v32  ;;  %v1961_v46 = vld [vmem:[%s2422_s16 + $0xc0] sm:$0xff] }
  0xfb   : > { %958 = vst [vmem:[%s3147_s9 + $0x260] sm:$0xff] %v870_v5  ;;  %959 = vst [vmem:[%s3147_s9 + $0x268] sm:$0xff] %v871_v4  ;;  %v994_v5 = vmul.f32 0.5, %v1961_v46  ;;  %v1962_v58 = vld [vmem:[%s2422_s16 + $0xc8] sm:$0xff]  ;;  %v3393_v61 = vld [vmem:[%s2422_s16 + $0x100] sm:$0xff] }
  0xfc   : > { %960 = vst [vmem:[%s3147_s9 + $0x270] sm:$0xff] %v872_v33  ;;  %961 = vst [vmem:[%s3147_s9 + $0x278] sm:$0xff] %v873_v53  ;;  %v995_v4 = vmul.f32 0.5, %v1962_v58  ;;  %v1963_v33 = vld [vmem:[%s2422_s16 + $0xd0] sm:$0xff]  ;;  %v3397_v59 = vld [vmem:[%s2422_s16 + $0x108] sm:$0xff] }
  0xfd   : > { %962 = vst [vmem:[%s3147_s9 + $0x280] sm:$0xff] %v874_v60  ;;  %963 = vst [vmem:[%s3147_s9 + $0x288] sm:$0xff] %v875_v30  ;;  %v996_v53 = vmul.f32 0.5, %v1963_v33  ;;  %v1964_v60 = vld [vmem:[%s2422_s16 + $0xd8] sm:$0xff]  ;;  %v3373_v30 = vld [vmem:[%s2422_s16 + $0xe0] sm:$0xff] }
  0xfe   : > { %964 = vst [vmem:[%s3147_s9 + $0x290] sm:$0xff] %v876_v54  ;;  %965 = vst [vmem:[%s3147_s9 + $0x298] sm:$0xff] %v877_v19  ;;  %v997_v10 = vmul.f32 0.5, %v1964_v60  ;;  %v998_v54 = vmul.f32 0.5, %v3373_v30  ;;  %v3377_v19 = vld [vmem:[%s2422_s16 + $0xe8] sm:$0xff]  ;;  %v3401_v17 = vld [vmem:[%s2422_s16 + $0x110] sm:$0xff] }
  0xff   : > { %966 = vst [vmem:[%s3147_s9 + $0x2a0] sm:$0xff] %v878_v45  ;;  %967 = vst [vmem:[%s3147_s9 + $0x2a8] sm:$0xff] %v879_v0  ;;  %v999_v45 = vmul.f32 0.5, %v3377_v19  ;;  %v3381_v0 = vld [vmem:[%s2422_s16 + $0xf0] sm:$0xff]  ;;  %v3405_v8 = vld [vmem:[%s2422_s16 + $0x118] sm:$0xff] }
 0x100   : > { %968 = vst [vmem:[%s3147_s9 + $0x2b0] sm:$0xff] %v880_v1  ;;  %969 = vst [vmem:[%s3147_s9 + $0x2b8] sm:$0xff] %v881_v9  ;;  %v1000_v31 = vmul.f32 0.5, %v3381_v0  ;;  %v3385_v1 = vld [vmem:[%s2422_s16 + $0xf8] sm:$0xff]  ;;  %v3413_v44 = vld [vmem:[%s2422_s16 + $0x120] sm:$0xff] }
 0x101   : > { %1058 = vst [vmem:[%s3326_s27] sm:$0xff] %v970_v2  ;;  %1059 = vst [vmem:[%s3326_s27 + $0x8] sm:$0xff] %v971_v6  ;;  %v1001_v9 = vmul.f32 0.5, %v3385_v1  ;;  %v1002_v2 = vmul.f32 0.5, %v3393_v61  ;;  %v1003_v6 = vmul.f32 0.5, %v3397_v59  ;;  %v3417_v15 = vld [vmem:[%s2422_s16 + $0x128] sm:$0xff]  ;;  %v3421_v21 = vld [vmem:[%s2422_s16 + $0x130] sm:$0xff] }
 0x102   : > { %1060 = vst [vmem:[%s3326_s27 + $0x10] sm:$0xff] %v972_v7  ;;  %1061 = vst [vmem:[%s3326_s27 + $0x18] sm:$0xff] %v973_v13  ;;  %v1004_v7 = vmul.f32 0.5, %v3401_v17  ;;  %v1005_v13 = vmul.f32 0.5, %v3405_v8  ;;  %v3425_v27 = vld [vmem:[%s2422_s16 + $0x138] sm:$0xff]  ;;  %v3433_v29 = vld [vmem:[%s2422_s16 + $0x140] sm:$0xff] }
 0x103   : > { %1062 = vst [vmem:[%s3326_s27 + $0x20] sm:$0xff] %v974_v14  ;;  %1063 = vst [vmem:[%s3326_s27 + $0x28] sm:$0xff] %v975_v20  ;;  %v1006_v14 = vmul.f32 0.5, %v3413_v44  ;;  %v1007_v20 = vmul.f32 0.5, %v3417_v15  ;;  %v3437_v35 = vld [vmem:[%s2422_s16 + $0x148] sm:$0xff]  ;;  %v3441_v41 = vld [vmem:[%s2422_s16 + $0x150] sm:$0xff] }
 0x104   : > { %1064 = vst [vmem:[%s3326_s27 + $0x30] sm:$0xff] %v976_v22  ;;  %1065 = vst [vmem:[%s3326_s27 + $0x38] sm:$0xff] %v977_v28  ;;  %v1008_v22 = vmul.f32 0.5, %v3421_v21  ;;  %v1009_v28 = vmul.f32 0.5, %v3425_v27  ;;  %v3445_v43 = vld [vmem:[%s2422_s16 + $0x158] sm:$0xff]  ;;  %v3453_v49 = vld [vmem:[%s2422_s16 + $0x160] sm:$0xff] }
 0x105   : > { %1066 = vst [vmem:[%s3326_s27 + $0x40] sm:$0xff] %v978_v34  ;;  %1067 = vst [vmem:[%s3326_s27 + $0x48] sm:$0xff] %v979_v36  ;;  %v1010_v34 = vmul.f32 0.5, %v3433_v29  ;;  %v1011_v36 = vmul.f32 0.5, %v3437_v35  ;;  %v3457_v55 = vld [vmem:[%s2422_s16 + $0x168] sm:$0xff]  ;;  %v3461_v57 = vld [vmem:[%s2422_s16 + $0x170] sm:$0xff] }
 0x106   : > { %1068 = vst [vmem:[%s3326_s27 + $0x50] sm:$0xff] %v980_v42  ;;  %1069 = vst [vmem:[%s3326_s27 + $0x58] sm:$0xff] %v981_v48  ;;  %v1012_v42 = vmul.f32 0.5, %v3441_v41  ;;  %v1013_v48 = vmul.f32 0.5, %v3445_v43  ;;  %v3465_v63 = vld [vmem:[%s2422_s16 + $0x178] sm:$0xff]  ;;  %v3473_v11 = vld [vmem:[%s2422_s16 + $0x180] sm:$0xff] }
 0x107   : > { %1070 = vst [vmem:[%s3326_s27 + $0x60] sm:$0xff] %v982_v50  ;;  %1071 = vst [vmem:[%s3326_s27 + $0x68] sm:$0xff] %v983_v56  ;;  %v1014_v50 = vmul.f32 0.5, %v3453_v49  ;;  %v1015_v56 = vmul.f32 0.5, %v3457_v55  ;;  %v3477_v16 = vld [vmem:[%s2422_s16 + $0x188] sm:$0xff]  ;;  %v3481_v25 = vld [vmem:[%s2422_s16 + $0x190] sm:$0xff] }
 0x108   : > { %1072 = vst [vmem:[%s3326_s27 + $0x70] sm:$0xff] %v984_v62  ;;  %1073 = vst [vmem:[%s3326_s27 + $0x78] sm:$0xff] %v985_v3  ;;  %v1016_v62 = vmul.f32 0.5, %v3461_v57  ;;  %v1017_v3 = vmul.f32 0.5, %v3465_v63  ;;  %v3485_v37 = vld [vmem:[%s2422_s16 + $0x198] sm:$0xff]  ;;  %v3493_v39 = vld [vmem:[%s2422_s16 + $0x1a0] sm:$0xff] }
 0x109   : > { %1074 = vst [vmem:[%s3326_s27 + $0x80] sm:$0xff] %v986_v12  ;;  %1075 = vst [vmem:[%s3326_s27 + $0x88] sm:$0xff] %v987_v24  ;;  %v1018_v12 = vmul.f32 0.5, %v3473_v11  ;;  %v1019_v24 = vmul.f32 0.5, %v3477_v16  ;;  %v3497_v23 = vld [vmem:[%s2422_s16 + $0x1a8] sm:$0xff]  ;;  %v3501_v18 = vld [vmem:[%s2422_s16 + $0x1b0] sm:$0xff] }
 0x10a   : > { %1076 = vst [vmem:[%s3326_s27 + $0x90] sm:$0xff] %v988_v26  ;;  %1077 = vst [vmem:[%s3326_s27 + $0x98] sm:$0xff] %v989_v38  ;;  %v1020_v26 = vmul.f32 0.5, %v3481_v25  ;;  %v1021_v38 = vmul.f32 0.5, %v3485_v37  ;;  %v3505_v32 = vld [vmem:[%s2422_s16 + $0x1b8] sm:$0xff]  ;;  %v3513_v46 = vld [vmem:[%s2422_s16 + $0x1c0] sm:$0xff] }
 0x10b   : > { %1078 = vst [vmem:[%s3326_s27 + $0xa0] sm:$0xff] %v990_v47  ;;  %1079 = vst [vmem:[%s3326_s27 + $0xa8] sm:$0xff] %v991_v40  ;;  %v1022_v47 = vmul.f32 0.5, %v3493_v39  ;;  %v1023_v40 = vmul.f32 0.5, %v3497_v23  ;;  %v3517_v58 = vld [vmem:[%s2422_s16 + $0x1c8] sm:$0xff]  ;;  %v3521_v33 = vld [vmem:[%s2422_s16 + $0x1d0] sm:$0xff] }
 0x10c   : > { %1080 = vst [vmem:[%s3326_s27 + $0xb0] sm:$0xff] %v992_v51  ;;  %1081 = vst [vmem:[%s3326_s27 + $0xb8] sm:$0xff] %v993_v52  ;;  %v1024_v51 = vmul.f32 0.5, %v3501_v18  ;;  %v1025_v52 = vmul.f32 0.5, %v3505_v32  ;;  %v3525_v60 = vld [vmem:[%s2422_s16 + $0x1d8] sm:$0xff] }
 0x10d   : > { %1082 = vst [vmem:[%s3326_s27 + $0xc0] sm:$0xff] %v994_v5  ;;  %1083 = vst [vmem:[%s3326_s27 + $0xc8] sm:$0xff] %v995_v4  ;;  %v1026_v5 = vmul.f32 0.5, %v3513_v46  ;;  %v1027_v4 = vmul.f32 0.5, %v3517_v58 }
 0x10e   : > { %1084 = vst [vmem:[%s3326_s27 + $0xd0] sm:$0xff] %v996_v53  ;;  %1085 = vst [vmem:[%s3326_s27 + $0xd8] sm:$0xff] %v997_v10  ;;  %v1028_v53 = vmul.f32 0.5, %v3521_v33  ;;  %v1029_v10 = vmul.f32 0.5, %v3525_v60 }
 0x10f   : > { %1086 = vst [vmem:[%s3326_s27 + $0xe0] sm:$0xff] %v998_v54  ;;  %1087 = vst [vmem:[%s3326_s27 + $0xe8] sm:$0xff] %v999_v45  ;;  %v3533_v54 = vld [vmem:[%s2422_s16 + $0x1e0] sm:$0xff] }
 0x110   : > { %1088 = vst [vmem:[%s3326_s27 + $0xf0] sm:$0xff] %v1000_v31  ;;  %1089 = vst [vmem:[%s3326_s27 + $0xf8] sm:$0xff] %v1001_v9  ;;  %v1030_v45 = vmul.f32 0.5, %v3533_v54  ;;  %v3537_v31 = vld [vmem:[%s2422_s16 + $0x1e8] sm:$0xff] }
 0x111   : > { %1090 = vst [vmem:[%s3326_s27 + $0x100] sm:$0xff] %v1002_v2  ;;  %1091 = vst [vmem:[%s3326_s27 + $0x108] sm:$0xff] %v1003_v6  ;;  %v1031_v9 = vmul.f32 0.5, %v3537_v31  ;;  %v3541_v2 = vld [vmem:[%s2422_s16 + $0x1f0] sm:$0xff] }
 0x112   : > { %1092 = vst [vmem:[%s3326_s27 + $0x110] sm:$0xff] %v1004_v7  ;;  %1093 = vst [vmem:[%s3326_s27 + $0x118] sm:$0xff] %v1005_v13  ;;  %v1032_v6 = vmul.f32 0.5, %v3541_v2  ;;  %v3545_v7 = vld [vmem:[%s2422_s16 + $0x1f8] sm:$0xff] }
 0x113   : > { %1094 = vst [vmem:[%s3326_s27 + $0x120] sm:$0xff] %v1006_v14  ;;  %1095 = vst [vmem:[%s3326_s27 + $0x128] sm:$0xff] %v1007_v20  ;;  %v1033_v13 = vmul.f32 0.5, %v3545_v7  ;;  %v3553_v14 = vld [vmem:[%s2422_s16 + $0x200] sm:$0xff] }
 0x114   : > { %1096 = vst [vmem:[%s3326_s27 + $0x130] sm:$0xff] %v1008_v22  ;;  %1097 = vst [vmem:[%s3326_s27 + $0x138] sm:$0xff] %v1009_v28  ;;  %v1034_v20 = vmul.f32 0.5, %v3553_v14  ;;  %v3557_v22 = vld [vmem:[%s2422_s16 + $0x208] sm:$0xff] }
 0x115   : > { %1098 = vst [vmem:[%s3326_s27 + $0x140] sm:$0xff] %v1010_v34  ;;  %1099 = vst [vmem:[%s3326_s27 + $0x148] sm:$0xff] %v1011_v36  ;;  %v1035_v28 = vmul.f32 0.5, %v3557_v22  ;;  %v3561_v34 = vld [vmem:[%s2422_s16 + $0x210] sm:$0xff] }
 0x116   : > { %1100 = vst [vmem:[%s3326_s27 + $0x150] sm:$0xff] %v1012_v42  ;;  %1101 = vst [vmem:[%s3326_s27 + $0x158] sm:$0xff] %v1013_v48  ;;  %v1036_v36 = vmul.f32 0.5, %v3561_v34  ;;  %v3565_v42 = vld [vmem:[%s2422_s16 + $0x218] sm:$0xff] }
 0x117   : > { %1102 = vst [vmem:[%s3326_s27 + $0x160] sm:$0xff] %v1014_v50  ;;  %1103 = vst [vmem:[%s3326_s27 + $0x168] sm:$0xff] %v1015_v56  ;;  %v1037_v48 = vmul.f32 0.5, %v3565_v42  ;;  %v3573_v50 = vld [vmem:[%s2422_s16 + $0x220] sm:$0xff] }
 0x118   : > { %1104 = vst [vmem:[%s3326_s27 + $0x170] sm:$0xff] %v1016_v62  ;;  %1105 = vst [vmem:[%s3326_s27 + $0x178] sm:$0xff] %v1017_v3  ;;  %v1038_v56 = vmul.f32 0.5, %v3573_v50  ;;  %v3577_v62 = vld [vmem:[%s2422_s16 + $0x228] sm:$0xff] }
 0x119   : > { %1106 = vst [vmem:[%s3326_s27 + $0x180] sm:$0xff] %v1018_v12  ;;  %1107 = vst [vmem:[%s3326_s27 + $0x188] sm:$0xff] %v1019_v24  ;;  %v1039_v3 = vmul.f32 0.5, %v3577_v62  ;;  %v3581_v12 = vld [vmem:[%s2422_s16 + $0x230] sm:$0xff] }
 0x11a   : > { %1108 = vst [vmem:[%s3326_s27 + $0x190] sm:$0xff] %v1020_v26  ;;  %1109 = vst [vmem:[%s3326_s27 + $0x198] sm:$0xff] %v1021_v38  ;;  %v1040_v24 = vmul.f32 0.5, %v3581_v12  ;;  %v3585_v26 = vld [vmem:[%s2422_s16 + $0x238] sm:$0xff] }
 0x11b   : > { %1110 = vst [vmem:[%s3326_s27 + $0x1a0] sm:$0xff] %v1022_v47  ;;  %1111 = vst [vmem:[%s3326_s27 + $0x1a8] sm:$0xff] %v1023_v40  ;;  %v1041_v38 = vmul.f32 0.5, %v3585_v26  ;;  %v3593_v47 = vld [vmem:[%s2422_s16 + $0x240] sm:$0xff] }
 0x11c   : > { %1112 = vst [vmem:[%s3326_s27 + $0x1b0] sm:$0xff] %v1024_v51  ;;  %1113 = vst [vmem:[%s3326_s27 + $0x1b8] sm:$0xff] %v1025_v52  ;;  %v1042_v40 = vmul.f32 0.5, %v3593_v47  ;;  %v3597_v51 = vld [vmem:[%s2422_s16 + $0x248] sm:$0xff] }
 0x11d   : > { %1114 = vst [vmem:[%s3326_s27 + $0x1c0] sm:$0xff] %v1026_v5  ;;  %1115 = vst [vmem:[%s3326_s27 + $0x1c8] sm:$0xff] %v1027_v4  ;;  %v1043_v52 = vmul.f32 0.5, %v3597_v51  ;;  %v3601_v5 = vld [vmem:[%s2422_s16 + $0x250] sm:$0xff] }
 0x11e   : > { %1116 = vst [vmem:[%s3326_s27 + $0x1d0] sm:$0xff] %v1028_v53  ;;  %1117 = vst [vmem:[%s3326_s27 + $0x1d8] sm:$0xff] %v1029_v10  ;;  %v1044_v4 = vmul.f32 0.5, %v3601_v5  ;;  %v3605_v53 = vld [vmem:[%s2422_s16 + $0x258] sm:$0xff] }
 0x11f   : > { %1118 = vst [vmem:[%s3326_s27 + $0x1e0] sm:$0xff] %v1030_v45  ;;  %1119 = vst [vmem:[%s3326_s27 + $0x1e8] sm:$0xff] %v1031_v9  ;;  %v1045_v10 = vmul.f32 0.5, %v3605_v53  ;;  %v3613_v45 = vld [vmem:[%s2422_s16 + $0x260] sm:$0xff] }
 0x120   : > { %1120 = vst [vmem:[%s3326_s27 + $0x1f0] sm:$0xff] %v1032_v6  ;;  %1121 = vst [vmem:[%s3326_s27 + $0x1f8] sm:$0xff] %v1033_v13  ;;  %v1046_v9 = vmul.f32 0.5, %v3613_v45  ;;  %v3617_v6 = vld [vmem:[%s2422_s16 + $0x268] sm:$0xff] }
 0x121   : > { %1122 = vst [vmem:[%s3326_s27 + $0x200] sm:$0xff] %v1034_v20  ;;  %1123 = vst [vmem:[%s3326_s27 + $0x208] sm:$0xff] %v1035_v28  ;;  %v1047_v13 = vmul.f32 0.5, %v3617_v6  ;;  %v3621_v20 = vld [vmem:[%s2422_s16 + $0x270] sm:$0xff] }
 0x122   : > { %1124 = vst [vmem:[%s3326_s27 + $0x210] sm:$0xff] %v1036_v36  ;;  %1125 = vst [vmem:[%s3326_s27 + $0x218] sm:$0xff] %v1037_v48  ;;  %v1048_v28 = vmul.f32 0.5, %v3621_v20  ;;  %v3625_v36 = vld [vmem:[%s2422_s16 + $0x278] sm:$0xff] }
 0x123   : > { %1126 = vst [vmem:[%s3326_s27 + $0x220] sm:$0xff] %v1038_v56  ;;  %1127 = vst [vmem:[%s3326_s27 + $0x228] sm:$0xff] %v1039_v3  ;;  %v1049_v48 = vmul.f32 0.5, %v3625_v36  ;;  %v3633_v56 = vld [vmem:[%s2422_s16 + $0x280] sm:$0xff] }
 0x124   : > { %1128 = vst [vmem:[%s3326_s27 + $0x230] sm:$0xff] %v1040_v24  ;;  %1129 = vst [vmem:[%s3326_s27 + $0x238] sm:$0xff] %v1041_v38  ;;  %v1050_v3 = vmul.f32 0.5, %v3633_v56  ;;  %v3637_v24 = vld [vmem:[%s2422_s16 + $0x288] sm:$0xff] }
 0x125   : > { %4325 = vst [vmem:[#allocation50_spill] sm:$0xff] %v3621_v20  ;;  %4326 = vst [vmem:[#allocation54_spill] sm:$0xff] %v3625_v36  ;;  %v1051_v38 = vmul.f32 0.5, %v3637_v24  ;;  %v3641_v20 = vld [vmem:[%s2422_s16 + $0x290] sm:$0xff] }
 0x126   : > { %1130 = vst [vmem:[%s3326_s27 + $0x240] sm:$0xff] %v1042_v40  ;;  %1131 = vst [vmem:[%s3326_s27 + $0x248] sm:$0xff] %v1043_v52  ;;  %v1052_v40 = vmul.f32 0.5, %v3641_v20  ;;  %v3645_v52 = vld [vmem:[%s2422_s16 + $0x298] sm:$0xff]  ;;  %v3661_v36 = vld [vmem:[%s2422_s16 + $0x2b0] sm:$0xff] }
 0x127   : > { %1132 = vst [vmem:[%s3326_s27 + $0x250] sm:$0xff] %v1044_v4  ;;  %1133 = vst [vmem:[%s3326_s27 + $0x258] sm:$0xff] %v1045_v10  ;;  %v1053_v4 = vmul.f32 0.5, %v3645_v52  ;;  %v3653_v10 = vld [vmem:[%s2422_s16 + $0x2a0] sm:$0xff] }
 0x128   : > { %4327 = vst [vmem:[#allocation55_spill] sm:$0xff] %v3633_v56  ;;  %4328 = vst [vmem:[#allocation56_spill] sm:$0xff] %v3637_v24  ;;  %v1054_v24 = vmul.f32 0.5, %v3653_v10  ;;  %v3657_v56 = vld [vmem:[%s2422_s16 + $0x2a8] sm:$0xff] }
 0x129   : > { %4329 = vst [vmem:[#allocation58_spill] sm:$0xff] %v3641_v20  ;;  %4330 = vst [vmem:[#allocation59_spill] sm:$0xff] %v3645_v52  ;;  %v1055_v20 = vmul.f32 0.5, %v3657_v56  ;;  %v1056_v52 = vmul.f32 0.5, %v3661_v36 }
 0x12a   : > { %1134 = vst [vmem:[%s3326_s27 + $0x260] sm:$0xff] %v1046_v9  ;;  %1135 = vst [vmem:[%s3326_s27 + $0x268] sm:$0xff] %v1047_v13  ;;  %v3665_v9 = vld [vmem:[%s2422_s16 + $0x2b8] sm:$0xff] }
 0x12b   : > { %1136 = vst [vmem:[%s3326_s27 + $0x270] sm:$0xff] %v1048_v28  ;;  %1137 = vst [vmem:[%s3326_s27 + $0x278] sm:$0xff] %v1049_v48  ;;  %v1057_v13 = vmul.f32 0.5, %v3665_v9  ;;  %v1174_v28 = vmul.f32 %v3373_v30, %v3373_v30  ;;  %v1175_v48 = vmul.f32 %v3377_v19, %v3377_v19  ;;  %v1178_v30 = vmul.f32 %v3393_v61, %v3393_v61 }
 0x12c   : > { %4331 = vst [vmem:[#allocation60_spill] sm:$0xff] %v3661_v36  ;;  %4332 = vst [vmem:[#allocation18_spill] sm:$0xff] %v3665_v9  ;;  %v1176_v36 = vmul.f32 %v3381_v0, %v3381_v0  ;;  %v1177_v9 = vmul.f32 %v3385_v1, %v3385_v1  ;;  %v1179_v19 = vmul.f32 %v3397_v59, %v3397_v59 }
 0x12d   : > { %1138 = vst [vmem:[%s3326_s27 + $0x280] sm:$0xff] %v1050_v3  ;;  %1139 = vst [vmem:[%s3326_s27 + $0x288] sm:$0xff] %v1051_v38  ;;  %v1180_v0 = vmul.f32 %v3401_v17, %v3401_v17  ;;  %v1181_v1 = vmul.f32 %v3405_v8, %v3405_v8  ;;  %v1182_v61 = vmul.f32 %v3413_v44, %v3413_v44 }
 0x12e   : > { %1140 = vst [vmem:[%s3326_s27 + $0x290] sm:$0xff] %v1052_v40  ;;  %1141 = vst [vmem:[%s3326_s27 + $0x298] sm:$0xff] %v1053_v4  ;;  %v1183_v59 = vmul.f32 %v3417_v15, %v3417_v15  ;;  %v1184_v17 = vmul.f32 %v3421_v21, %v3421_v21  ;;  %v1185_v8 = vmul.f32 %v3425_v27, %v3425_v27 }
 0x12f   : > { %1142 = vst [vmem:[%s3326_s27 + $0x2a0] sm:$0xff] %v1054_v24  ;;  %1143 = vst [vmem:[%s3326_s27 + $0x2a8] sm:$0xff] %v1055_v20  ;;  %v1186_v44 = vmul.f32 %v3433_v29, %v3433_v29  ;;  %v1187_v15 = vmul.f32 %v3437_v35, %v3437_v35  ;;  %v1188_v21 = vmul.f32 %v3441_v41, %v3441_v41  ;;  %v4333_v20 = vld [vmem:[#allocation50_spill] sm:$0xff]  ;;  %v4335_v3 = vld [vmem:[#allocation55_spill] sm:$0xff] }
 0x130   : > { %1144 = vst [vmem:[%s3326_s27 + $0x2b0] sm:$0xff] %v1056_v52  ;;  %1145 = vst [vmem:[%s3326_s27 + $0x2b8] sm:$0xff] %v1057_v13  ;;  %v1189_v27 = vmul.f32 %v3445_v43, %v3445_v43  ;;  %v1190_v29 = vmul.f32 %v3453_v49, %v3453_v49  ;;  %v1191_v35 = vmul.f32 %v3457_v55, %v3457_v55  ;;  %v4336_v24 = vld [vmem:[#allocation56_spill] sm:$0xff]  ;;  %v4337_v38 = vld [vmem:[#allocation58_spill] sm:$0xff] }
 0x131   : > { %1262 = vst [vmem:[%s2485_s14 + $0xe0] sm:$0xff] %v1174_v28  ;;  %1263 = vst [vmem:[%s2485_s14 + $0xe8] sm:$0xff] %v1175_v48  ;;  %v1192_v41 = vmul.f32 %v3461_v57, %v3461_v57  ;;  %v1193_v43 = vmul.f32 %v3465_v63, %v3465_v63  ;;  %v1194_v49 = vmul.f32 %v3473_v11, %v3473_v11  ;;  %v4338_v52 = vld [vmem:[#allocation59_spill] sm:$0xff] }
 0x132   : > { %1264 = vst [vmem:[%s2485_s14 + $0xf0] sm:$0xff] %v1176_v36  ;;  %1265 = vst [vmem:[%s2485_s14 + $0xf8] sm:$0xff] %v1177_v9  ;;  %v1195_v55 = vmul.f32 %v3477_v16, %v3477_v16  ;;  %v1196_v57 = vmul.f32 %v3481_v25, %v3481_v25  ;;  %v1197_v63 = vmul.f32 %v3485_v37, %v3485_v37  ;;  %v4334_v36 = vld [vmem:[#allocation54_spill] sm:$0xff] }
 0x133   : > { %1266 = vst [vmem:[%s2485_s14 + $0x100] sm:$0xff] %v1178_v30  ;;  %1267 = vst [vmem:[%s2485_s14 + $0x108] sm:$0xff] %v1179_v19  ;;  %v1198_v11 = vmul.f32 %v3493_v39, %v3493_v39  ;;  %v1199_v16 = vmul.f32 %v3497_v23, %v3497_v23  ;;  %v1200_v25 = vmul.f32 %v3501_v18, %v3501_v18  ;;  %v4339_v28 = vld [vmem:[#allocation60_spill] sm:$0xff]  ;;  %v4340_v30 = vld [vmem:[#allocation18_spill] sm:$0xff] }
 0x134   : > { %1268 = vst [vmem:[%s2485_s14 + $0x110] sm:$0xff] %v1180_v0  ;;  %1269 = vst [vmem:[%s2485_s14 + $0x118] sm:$0xff] %v1181_v1  ;;  %v1201_v37 = vmul.f32 %v3505_v32, %v3505_v32  ;;  %v1202_v39 = vmul.f32 %v3513_v46, %v3513_v46  ;;  %v1203_v23 = vmul.f32 %v3517_v58, %v3517_v58 }
 0x135   : > { %1270 = vst [vmem:[%s2485_s14 + $0x120] sm:$0xff] %v1182_v61  ;;  %1271 = vst [vmem:[%s2485_s14 + $0x128] sm:$0xff] %v1183_v59  ;;  %v1204_v18 = vmul.f32 %v3521_v33, %v3521_v33  ;;  %v1205_v32 = vmul.f32 %v3525_v60, %v3525_v60  ;;  %v1206_v46 = vmul.f32 %v3533_v54, %v3533_v54 }
 0x136   : > { %1272 = vst [vmem:[%s2485_s14 + $0x130] sm:$0xff] %v1184_v17  ;;  %1273 = vst [vmem:[%s2485_s14 + $0x138] sm:$0xff] %v1185_v8  ;;  %v1207_v58 = vmul.f32 %v3537_v31, %v3537_v31  ;;  %v1208_v33 = vmul.f32 %v3541_v2, %v3541_v2  ;;  %v1209_v60 = vmul.f32 %v3545_v7, %v3545_v7 }
 0x137   : > { %1274 = vst [vmem:[%s2485_s14 + $0x140] sm:$0xff] %v1186_v44  ;;  %1275 = vst [vmem:[%s2485_s14 + $0x148] sm:$0xff] %v1187_v15  ;;  %v1210_v54 = vmul.f32 %v3553_v14, %v3553_v14  ;;  %v1211_v31 = vmul.f32 %v3557_v22, %v3557_v22  ;;  %v1212_v2 = vmul.f32 %v3561_v34, %v3561_v34 }
 0x138   : > { %1276 = vst [vmem:[%s2485_s14 + $0x150] sm:$0xff] %v1188_v21  ;;  %1277 = vst [vmem:[%s2485_s14 + $0x158] sm:$0xff] %v1189_v27  ;;  %v1213_v7 = vmul.f32 %v3565_v42, %v3565_v42  ;;  %v1214_v14 = vmul.f32 %v3573_v50, %v3573_v50  ;;  %v1215_v22 = vmul.f32 %v3577_v62, %v3577_v62 }
 0x139   : > { %1278 = vst [vmem:[%s2485_s14 + $0x160] sm:$0xff] %v1190_v29  ;;  %1279 = vst [vmem:[%s2485_s14 + $0x168] sm:$0xff] %v1191_v35  ;;  %v1216_v34 = vmul.f32 %v3581_v12, %v3581_v12  ;;  %v1217_v42 = vmul.f32 %v3585_v26, %v3585_v26  ;;  %v1218_v50 = vmul.f32 %v3593_v47, %v3593_v47 }
 0x13a   : > { %1280 = vst [vmem:[%s2485_s14 + $0x170] sm:$0xff] %v1192_v41  ;;  %1281 = vst [vmem:[%s2485_s14 + $0x178] sm:$0xff] %v1193_v43  ;;  %v1219_v62 = vmul.f32 %v3597_v51, %v3597_v51  ;;  %v1220_v12 = vmul.f32 %v3601_v5, %v3601_v5  ;;  %v1221_v26 = vmul.f32 %v3605_v53, %v3605_v53 }
 0x13b   : > { %1282 = vst [vmem:[%s2485_s14 + $0x180] sm:$0xff] %v1194_v49  ;;  %1283 = vst [vmem:[%s2485_s14 + $0x188] sm:$0xff] %v1195_v55  ;;  %v1222_v47 = vmul.f32 %v3613_v45, %v3613_v45  ;;  %v1223_v51 = vmul.f32 %v3617_v6, %v3617_v6  ;;  %v1224_v5 = vmul.f32 %v4333_v20, %v4333_v20 }
 0x13c   : > { %1284 = vst [vmem:[%s2485_s14 + $0x190] sm:$0xff] %v1196_v57  ;;  %1285 = vst [vmem:[%s2485_s14 + $0x198] sm:$0xff] %v1197_v63  ;;  %v1225_v53 = vmul.f32 %v4334_v36, %v4334_v36  ;;  %v1226_v45 = vmul.f32 %v4335_v3, %v4335_v3  ;;  %v1227_v6 = vmul.f32 %v4336_v24, %v4336_v24 }
 0x13d   : > { %1286 = vst [vmem:[%s2485_s14 + $0x1a0] sm:$0xff] %v1198_v11  ;;  %1287 = vst [vmem:[%s2485_s14 + $0x1a8] sm:$0xff] %v1199_v16  ;;  %v1228_v40 = vmul.f32 %v4337_v38, %v4337_v38  ;;  %v1229_v4 = vmul.f32 %v4338_v52, %v4338_v52  ;;  %v1230_v9 = vmul.f32 %v3653_v10, %v3653_v10 }
 0x13e   : > { %1288 = vst [vmem:[%s2485_s14 + $0x1b0] sm:$0xff] %v1200_v25  ;;  %1289 = vst [vmem:[%s2485_s14 + $0x1b8] sm:$0xff] %v1201_v37  ;;  %v1231_v13 = vmul.f32 %v3657_v56, %v3657_v56  ;;  %v1232_v48 = vmul.f32 %v4339_v28, %v4339_v28  ;;  %v1233_v19 = vmul.f32 %v4340_v30, %v4340_v30 }
 0x13f   : > { %1290 = vst [vmem:[%s2485_s14 + $0x1c0] sm:$0xff] %v1202_v39  ;;  %1291 = vst [vmem:[%s2485_s14 + $0x1c8] sm:$0xff] %v1203_v23 }
 0x140   : > { %1292 = vst [vmem:[%s2485_s14 + $0x1d0] sm:$0xff] %v1204_v18  ;;  %1293 = vst [vmem:[%s2485_s14 + $0x1d8] sm:$0xff] %v1205_v32 }
 0x141   : > { %1294 = vst [vmem:[%s2485_s14 + $0x1e0] sm:$0xff] %v1206_v46  ;;  %1295 = vst [vmem:[%s2485_s14 + $0x1e8] sm:$0xff] %v1207_v58 }
 0x142   : > { %1296 = vst [vmem:[%s2485_s14 + $0x1f0] sm:$0xff] %v1208_v33  ;;  %1297 = vst [vmem:[%s2485_s14 + $0x1f8] sm:$0xff] %v1209_v60 }
 0x143   : > { %1298 = vst [vmem:[%s2485_s14 + $0x200] sm:$0xff] %v1210_v54  ;;  %1299 = vst [vmem:[%s2485_s14 + $0x208] sm:$0xff] %v1211_v31 }
 0x144   : > { %1300 = vst [vmem:[%s2485_s14 + $0x210] sm:$0xff] %v1212_v2  ;;  %1301 = vst [vmem:[%s2485_s14 + $0x218] sm:$0xff] %v1213_v7 }
 0x145   : > { %1302 = vst [vmem:[%s2485_s14 + $0x220] sm:$0xff] %v1214_v14  ;;  %1303 = vst [vmem:[%s2485_s14 + $0x228] sm:$0xff] %v1215_v22 }
 0x146   : > { %1304 = vst [vmem:[%s2485_s14 + $0x230] sm:$0xff] %v1216_v34  ;;  %1305 = vst [vmem:[%s2485_s14 + $0x238] sm:$0xff] %v1217_v42 }
 0x147   : > { %1306 = vst [vmem:[%s2485_s14 + $0x240] sm:$0xff] %v1218_v50  ;;  %1307 = vst [vmem:[%s2485_s14 + $0x248] sm:$0xff] %v1219_v62 }
 0x148   : > { %1308 = vst [vmem:[%s2485_s14 + $0x250] sm:$0xff] %v1220_v12  ;;  %1309 = vst [vmem:[%s2485_s14 + $0x258] sm:$0xff] %v1221_v26  ;;  %1349 = sbr.rel (!%p2356_p9) target bundleno = 364 (0x16c), region = 32 }
 0x149   : > { %1310 = vst [vmem:[%s2485_s14 + $0x260] sm:$0xff] %v1222_v47  ;;  %1311 = vst [vmem:[%s2485_s14 + $0x268] sm:$0xff] %v1223_v51 }
 0x14a   : > { %1312 = vst [vmem:[%s2485_s14 + $0x270] sm:$0xff] %v1224_v5  ;;  %1313 = vst [vmem:[%s2485_s14 + $0x278] sm:$0xff] %v1225_v53 }
 0x14b   : > { %1314 = vst [vmem:[%s2485_s14 + $0x280] sm:$0xff] %v1226_v45  ;;  %1315 = vst [vmem:[%s2485_s14 + $0x288] sm:$0xff] %v1227_v6 }
 0x14c   : > { %1316 = vst [vmem:[%s2485_s14 + $0x290] sm:$0xff] %v1228_v40  ;;  %1317 = vst [vmem:[%s2485_s14 + $0x298] sm:$0xff] %v1229_v4 }
 0x14d   : > { %1318 = vst [vmem:[%s2485_s14 + $0x2a0] sm:$0xff] %v1230_v9  ;;  %1319 = vst [vmem:[%s2485_s14 + $0x2a8] sm:$0xff] %v1231_v13 }
 0x14e   : > { %1320 = vst [vmem:[%s2485_s14 + $0x2b0] sm:$0xff] %v1232_v48  ;;  %1321 = vst [vmem:[%s2485_s14 + $0x2b8] sm:$0xff] %v1233_v19 }
 0x14f   : > { %s4354_s13 = smov (!%p1353_p8, %s1352_s13), 22 }
 0x150   : > { %s3868_s15 = sshll.u32 %s4354_s13, 9 }
 0x151   : > { %s1358_s16 = ssub.s32 11264, %s3868_s15 }
 0x152   : > { %1359 = vsyncadd %s4198_s28, %s1358_s16  ;;  %p1793_p11 = scmp.ne.s32.totalorder %s3868_s15, 0  ;;  %s1847_s24 = smul.u32 11264, %s2247_s21 }
 0x153   : > { %s1366_s12 = sshll.u32 %s2467_s29, 4  ;;  %s2260_s16 = smov [#allocation5]   ;;  %s3881_s12 = int_to_ptr.vmem [resolvable:$true] %s1366_s12 }
 0x154   : > { %s3879_s10 = scalar_lea.hbm %s4102_s1, %s1847_s24  ;;  %s2053_s13 = scalar_lea.vmem %s3881_s12, %s3868_s15 }
 0x155   : > { %p2054_p0 = scmp.ne.s32.totalorder %s3881_s12, %s2053_s13  ;;  %s2057_s28 = sshll.u32 %s2260_s16, 4  ;;  %s2058_s28 = int_to_ptr.vmem [resolvable:$false] %s2057_s28 }
 0x156   : > { %s2059_s22 = scalar_lea.vmem %s2058_s28, 22528  ;;  %p2060_p1 = scmp.lt.s32.totalorder %s3881_s12, %s2058_s28 }
 0x157   : > { %p2055_p12 = pnand %p2054_p0, %p1793_p11  ;;  %p2061_p2 = scmp.lt.s32.totalorder %s2059_s22, %s2053_s13 }
 0x159   : > { %p2056_p13 = pneg %p2055_p12  ;;  %p2062_p4 = por %p2061_p2, %p2060_p1 }
 0x15b   : > { %p2063_p5 = pnand %p2062_p4, %p2056_p13 }
 0x15d   : > { %2066 = shalt.err (!%p2063_p5)
}
 0x15e   : > { %s2067_s0 = scalar_lea.hbm %s3879_s10, %s3868_s15  ;;  %s2071_s24 = scalar_lea.hbm %s4102_s1, 32768 }
 0x15f   : > { %p2068_p6 = scmp.ne.s32.totalorder %s3879_s10, %s2067_s0  ;;  %p2072_p10 = scmp.lt.u32.totalorder %s3879_s10, %s4102_s1 }
 0x160   : > { %p2073_p8 = scmp.lt.u32.totalorder %s2071_s24, %s2067_s0  ;;  %p2075_p12 = scmp.lt.u32.totalorder %s2067_s0, %s3879_s10 }
 0x161   : > { %p2069_p3 = pnand %p2068_p6, %p1793_p11 }
 0x162   : > { %p2074_p0 = por %p2073_p8, %p2072_p10 }
 0x163   : > { %p2070_p7 = pneg %p2069_p3 }
 0x164   : > { %p2076_p13 = por %p2075_p12, %p2074_p0 }
 0x166   : > { %p2077_p1 = pnand %p2076_p13, %p2070_p7 }
 0x168   : > { %2080 = shalt.err (!%p2077_p1)
}
 0x169   : > { %s2261_s13 = smov 512   ;;  %s2262_s16 = smov 32  }
 0x16a   : > { %s4341_s26 = scalar_lea.sflag [#allocation4], %s2415_s11 }
 0x16b   : > { %1372 = dma.vmem_to_hbm [thread:$0]  (%p1793_p11), %s3881_s12, %s3868_s15, %s3879_s10, %s4341_s26, %s2261_s13, %s2261_s13, %s2262_s16  }
 0x16c PF: > { %1375 = sbr.rel (!%p2356_p9) target bundleno = 399 (0x18f), region = 36 }
 0x16d   : > { %s1376_s0 = smul.u32 (%p2356_p9), 22, %s2247_s21 }
 0x16f   : > { %s1378_s29 = ssub.s32 (%p2356_p9), 64, %s1376_s0 }
 0x170   : > { %p1379_p2 = scmp.lt.s32.totalorder (%p2356_p9), %s1378_s29, 22 }
 0x173   : > { %s4356_s29 = smov (!%p1379_p2, %s1378_s29), 22 }
 0x174   : > { %s3912_s24 = sshll.u32 %s4356_s29, 9 }
 0x175   : > { %s1384_s28 = ssub.s32 11264, %s3912_s24 }
 0x176   : > { %1385 = vsyncadd %s3859_s25, %s1384_s28  ;;  %p1800_p11 = scmp.ne.s32.totalorder %s3912_s24, 0  ;;  %s1848_s11 = smul.u32 11264, %s2247_s21 }
 0x177   : > { %s1392_s15 = sshll.u32 %s2963_s17, 4  ;;  %s2263_s16 = smov [#allocation6]   ;;  %s3924_s15 = int_to_ptr.vmem [resolvable:$true] %s1392_s15 }
 0x178   : > { %s3922_s22 = scalar_lea.hbm %s4103_s2, %s1848_s11  ;;  %s2081_s13 = scalar_lea.vmem %s3924_s15, %s3912_s24 }
 0x179   : > { %p2082_p4 = scmp.ne.s32.totalorder %s3924_s15, %s2081_s13  ;;  %s2085_s26 = sshll.u32 %s2263_s16, 4  ;;  %s2086_s26 = int_to_ptr.vmem [resolvable:$false] %s2085_s26 }
 0x17a   : > { %s2087_s0 = scalar_lea.vmem %s2086_s26, 22528  ;;  %p2088_p3 = scmp.lt.s32.totalorder %s3924_s15, %s2086_s26 }
 0x17b   : > { %p2083_p5 = pnand %p2082_p4, %p1800_p11  ;;  %p2089_p7 = scmp.lt.s32.totalorder %s2087_s0, %s2081_s13 }
 0x17d   : > { %p2084_p6 = pneg %p2083_p5  ;;  %p2090_p10 = por %p2089_p7, %p2088_p3 }
 0x17f   : > { %p2091_p8 = pnand %p2090_p10, %p2084_p6 }
 0x181   : > { %2094 = shalt.err (!%p2091_p8)
}
 0x182   : > { %s2095_s17 = scalar_lea.hbm %s3922_s22, %s3912_s24  ;;  %s2099_s11 = scalar_lea.hbm %s4103_s2, 32768 }
 0x183   : > { %p2096_p0 = scmp.ne.s32.totalorder %s3922_s22, %s2095_s17  ;;  %p2100_p1 = scmp.lt.u32.totalorder %s3922_s22, %s4103_s2 }
 0x184   : > { %p2101_p2 = scmp.lt.u32.totalorder %s2099_s11, %s2095_s17  ;;  %p2103_p5 = scmp.lt.u32.totalorder %s2095_s17, %s3922_s22 }
 0x185   : > { %p2097_p12 = pnand %p2096_p0, %p1800_p11 }
 0x186   : > { %p2102_p4 = por %p2101_p2, %p2100_p1 }
 0x187   : > { %p2098_p13 = pneg %p2097_p12 }
 0x188   : > { %p2104_p6 = por %p2103_p5, %p2102_p4 }
 0x18a   : > { %p2105_p3 = pnand %p2104_p6, %p2098_p13 }
 0x18c   : > { %2108 = shalt.err (!%p2105_p3)
}
 0x18d   : > { %s2264_s13 = smov 512   ;;  %s2265_s16 = smov 32  }
 0x18e   : > { %1398 = dma.vmem_to_hbm [thread:$0]  (%p1800_p11), %s3924_s15, %s3912_s24, %s3922_s22, %s3859_s25, %s2264_s13, %s2264_s13, %s2265_s16  }
 0x18f PF: > { %1401 = sbr.rel (!%p2356_p9) target bundleno = 434 (0x1b2), region = 40 }
 0x190   : > { %s1402_s26 = smul.u32 (%p2356_p9), 22, %s2247_s21 }
 0x192   : > { %s1404_s0 = ssub.s32 (%p2356_p9), 64, %s1402_s26 }
 0x193   : > { %p1405_p7 = scmp.lt.s32.totalorder (%p2356_p9), %s1404_s0, 22 }
 0x196   : > { %s4358_s0 = smov (!%p1405_p7, %s1404_s0), 22 }
 0x197   : > { %s3954_s17 = sshll.u32 %s4358_s0, 9 }
 0x198   : > { %s1410_s29 = ssub.s32 11264, %s3954_s17 }
 0x199   : > { %1411 = vsyncadd %s3859_s25, %s1410_s29  ;;  %p1807_p11 = scmp.ne.s32.totalorder %s3954_s17, 0  ;;  %s1849_s24 = smul.u32 11264, %s2247_s21 }
 0x19a   : > { %s1418_s15 = sshll.u32 %s3147_s9, 4  ;;  %s2266_s10 = smov [#allocation8]   ;;  %s3966_s15 = int_to_ptr.vmem [resolvable:$true] %s1418_s15 }
 0x19b   : > { %s3964_s11 = scalar_lea.hbm %s4104_s3, %s1849_s24  ;;  %s2109_s12 = scalar_lea.vmem %s3966_s15, %s3954_s17 }
 0x19c   : > { %p2110_p10 = scmp.ne.s32.totalorder %s3966_s15, %s2109_s12  ;;  %s2113_s13 = sshll.u32 %s2266_s10, 4  ;;  %s2114_s13 = int_to_ptr.vmem [resolvable:$false] %s2113_s13 }
 0x19d   : > { %s2115_s16 = scalar_lea.vmem %s2114_s13, 22528  ;;  %p2116_p12 = scmp.lt.s32.totalorder %s3966_s15, %s2114_s13 }
 0x19e   : > { %p2111_p8 = pnand %p2110_p10, %p1807_p11  ;;  %p2117_p13 = scmp.lt.s32.totalorder %s2115_s16, %s2109_s12 }
 0x1a0   : > { %p2112_p0 = pneg %p2111_p8  ;;  %p2118_p1 = por %p2117_p13, %p2116_p12 }
 0x1a2   : > { %p2119_p2 = pnand %p2118_p1, %p2112_p0 }
 0x1a4   : > { %2122 = shalt.err (!%p2119_p2)
}
 0x1a5   : > { %s2123_s9 = scalar_lea.hbm %s3964_s11, %s3954_s17  ;;  %s2127_s29 = scalar_lea.hbm %s4104_s3, 32768 }
 0x1a6   : > { %p2124_p4 = scmp.ne.s32.totalorder %s3964_s11, %s2123_s9  ;;  %p2128_p3 = scmp.lt.u32.totalorder %s3964_s11, %s4104_s3 }
 0x1a7   : > { %p2129_p7 = scmp.lt.u32.totalorder %s2127_s29, %s2123_s9  ;;  %p2131_p8 = scmp.lt.u32.totalorder %s2123_s9, %s3964_s11 }
 0x1a8   : > { %p2125_p5 = pnand %p2124_p4, %p1807_p11 }
 0x1a9   : > { %p2130_p10 = por %p2129_p7, %p2128_p3 }
 0x1aa   : > { %p2126_p6 = pneg %p2125_p5 }
 0x1ab   : > { %p2132_p0 = por %p2131_p8, %p2130_p10 }
 0x1ad   : > { %p2133_p12 = pnand %p2132_p0, %p2126_p6 }
 0x1af   : > { %2136 = shalt.err (!%p2133_p12)
}
 0x1b0   : > { %s2267_s28 = smov 512   ;;  %s2268_s12 = smov 32  }
 0x1b1   : > { %1424 = dma.vmem_to_hbm [thread:$0]  (%p1807_p11), %s3966_s15, %s3954_s17, %s3964_s11, %s3859_s25, %s2267_s28, %s2267_s28, %s2268_s12  }
 0x1b2 PF: > { %1427 = sbr.rel (!%p2356_p9) target bundleno = 469 (0x1d5), region = 44 }
 0x1b3   : > { %s1428_s10 = smul.u32 (%p2356_p9), 22, %s2247_s21 }
 0x1b5   : > { %s1430_s13 = ssub.s32 (%p2356_p9), 64, %s1428_s10 }
 0x1b6   : > { %p1431_p13 = scmp.lt.s32.totalorder (%p2356_p9), %s1430_s13, 22 }
 0x1b9   : > { %s4360_s13 = smov (!%p1431_p13, %s1430_s13), 22 }
 0x1ba   : > { %s3996_s16 = sshll.u32 %s4360_s13, 9 }
 0x1bb   : > { %s1436_s9 = ssub.s32 11264, %s3996_s16 }
 0x1bc   : > { %1437 = vsyncadd %s3863_s8, %s1436_s9  ;;  %p1814_p11 = scmp.ne.s32.totalorder %s3996_s16, 0  ;;  %s1850_s25 = smul.u32 11264, %s2247_s21 }
 0x1bd   : > { %s1444_s17 = sshll.u32 %s3326_s27, 4  ;;  %s2269_s29 = smov [#allocation9]   ;;  %s4008_s17 = int_to_ptr.vmem [resolvable:$true] %s1444_s17 }
 0x1be   : > { %s4006_s26 = scalar_lea.hbm %s4105_s4, %s1850_s25  ;;  %s2137_s0 = scalar_lea.vmem %s4008_s17, %s3996_s16 }
 0x1bf   : > { %p2138_p1 = scmp.ne.s32.totalorder %s4008_s17, %s2137_s0  ;;  %s2141_s24 = sshll.u32 %s2269_s29, 4  ;;  %s2142_s24 = int_to_ptr.vmem [resolvable:$false] %s2141_s24 }
 0x1c0   : > { %s2143_s22 = scalar_lea.vmem %s2142_s24, 22528  ;;  %p2144_p5 = scmp.lt.s32.totalorder %s4008_s17, %s2142_s24 }
 0x1c1   : > { %p2139_p2 = pnand %p2138_p1, %p1814_p11  ;;  %p2145_p6 = scmp.lt.s32.totalorder %s2143_s22, %s2137_s0 }
 0x1c3   : > { %p2140_p4 = pneg %p2139_p2  ;;  %p2146_p3 = por %p2145_p6, %p2144_p5 }
 0x1c5   : > { %p2147_p7 = pnand %p2146_p3, %p2140_p4 }
 0x1c7   : > { %2150 = shalt.err (!%p2147_p7)
}
 0x1c8   : > { %s2151_s27 = scalar_lea.hbm %s4006_s26, %s3996_s16  ;;  %s2155_s10 = scalar_lea.hbm %s4105_s4, 32768 }
 0x1c9   : > { %p2152_p10 = scmp.ne.s32.totalorder %s4006_s26, %s2151_s27  ;;  %p2156_p12 = scmp.lt.u32.totalorder %s4006_s26, %s4105_s4 }
 0x1ca   : > { %p2157_p13 = scmp.lt.u32.totalorder %s2155_s10, %s2151_s27  ;;  %p2159_p2 = scmp.lt.u32.totalorder %s2151_s27, %s4006_s26 }
 0x1cb   : > { %p2153_p8 = pnand %p2152_p10, %p1814_p11 }
 0x1cc   : > { %p2158_p1 = por %p2157_p13, %p2156_p12 }
 0x1cd   : > { %p2154_p0 = pneg %p2153_p8 }
 0x1ce   : > { %p2160_p4 = por %p2159_p2, %p2158_p1 }
 0x1d0   : > { %p2161_p5 = pnand %p2160_p4, %p2154_p0 }
 0x1d2   : > { %2164 = shalt.err (!%p2161_p5)
}
 0x1d3   : > { %s2270_s25 = smov 512   ;;  %s2271_s15 = smov 32  }
 0x1d4   : > { %1450 = dma.vmem_to_hbm [thread:$0]  (%p1814_p11), %s4008_s17, %s3996_s16, %s4006_s26, %s3863_s8, %s2270_s25, %s2270_s25, %s2271_s15  }
 0x1d5 PF: > { %1453 = sbr.rel (!%p2356_p9) target bundleno = 504 (0x1f8), region = 48 }
 0x1d6   : > { %s1454_s11 = smul.u32 (%p2356_p9), 22, %s2247_s21 }
 0x1d8   : > { %s1456_s0 = ssub.s32 (%p2356_p9), 64, %s1454_s11 }
 0x1d9   : > { %p1457_p6 = scmp.lt.s32.totalorder (%p2356_p9), %s1456_s0, 22 }
 0x1dc   : > { %s4362_s0 = smov (!%p1457_p6, %s1456_s0), 22 }
 0x1dd   : > { %s4038_s29 = sshll.u32 %s4362_s0, 9 }
 0x1de   : > { %s1462_s24 = ssub.s32 11264, %s4038_s29 }
 0x1df   : > { %1463 = vsyncadd %s3863_s8, %s1462_s24  ;;  %p1821_p11 = scmp.ne.s32.totalorder %s4038_s29, 0  ;;  %s1851_s16 = smul.u32 11264, %s2247_s21 }
 0x1e0   : > { %s1470_s30 = sshll.u32 %s2485_s14, 4  ;;  %s2272_s28 = smov [#allocation11]   ;;  %s4050_s30 = int_to_ptr.vmem [resolvable:$true] %s1470_s30 }
 0x1e1   : > { %s4048_s22 = scalar_lea.hbm %s4106_s5, %s1851_s16  ;;  %s2165_s27 = scalar_lea.vmem %s4050_s30, %s4038_s29 }
 0x1e2   : > { %p2166_p9 = scmp.ne.s32.totalorder %s4050_s30, %s2165_s27  ;;  %s2169_s12 = sshll.u32 %s2272_s28, 4  ;;  %s2170_s12 = int_to_ptr.vmem [resolvable:$false] %s2169_s12 }
 0x1e3   : > { %s2171_s21 = scalar_lea.vmem %s2170_s12, 22528  ;;  %p2172_p10 = scmp.lt.s32.totalorder %s4050_s30, %s2170_s12 }
 0x1e4   : > { %p2167_p3 = pnand %p2166_p9, %p1821_p11  ;;  %p2173_p8 = scmp.lt.s32.totalorder %s2171_s21, %s2165_s27 }
 0x1e6   : > { %p2168_p7 = pneg %p2167_p3  ;;  %p2174_p0 = por %p2173_p8, %p2172_p10 }
 0x1e8   : > { %p2175_p12 = pnand %p2174_p0, %p2168_p7 }
 0x1ea   : > { %2178 = shalt.err (!%p2175_p12)
}
 0x1eb   : > { %s2179_s14 = scalar_lea.hbm %s4048_s22, %s4038_s29  ;;  %s2183_s9 = scalar_lea.hbm %s4106_s5, 32768 }
 0x1ec   : > { %p2180_p13 = scmp.ne.s32.totalorder %s4048_s22, %s2179_s14  ;;  %p2184_p4 = scmp.lt.u32.totalorder %s4048_s22, %s4106_s5 }
 0x1ed   : > { %p2185_p5 = scmp.lt.u32.totalorder %s2183_s9, %s2179_s14  ;;  %p2187_p9 = scmp.lt.u32.totalorder %s2179_s14, %s4048_s22 }
 0x1ee   : > { %p2181_p1 = pnand %p2180_p13, %p1821_p11 }
 0x1ef   : > { %p2186_p6 = por %p2185_p5, %p2184_p4 }
 0x1f0   : > { %p2182_p2 = pneg %p2181_p1 }
 0x1f1   : > { %p2188_p3 = por %p2187_p9, %p2186_p6 }
 0x1f3   : > { %p2189_p7 = pnand %p2188_p3, %p2182_p2 }
 0x1f5   : > { %2192 = shalt.err (!%p2189_p7)
}
 0x1f6   : > { %s2273_s11 = smov 512   ;;  %s2274_s0 = smov 32  }
 0x1f7   : > { %1476 = dma.vmem_to_hbm [thread:$0]  (%p1821_p11), %s4050_s30, %s4038_s29, %s4048_s22, %s3863_s8, %s2273_s11, %s2273_s11, %s2274_s0  }
 0x1f8 PF: > { %p1876_p10 = scmp.ge.s32.totalorder %s2255_s23, 2  ;;  %s1485_s24 = sand.u32 1, %s2235_s18  }
 0x1f9   : > { %p4342_p8 = scmp.ne.s32.totalorder %s4205_s7, 0  ;;  %s1486_s16 = scalar_lea.sflag [#allocation4], %s1485_s24 }
 0x1fb   : > { %p1861_p0 = pnand %p1876_p10, %p4342_p8 }
 0x1fd   : > { %2222 = dma.done.wait (!%p1861_p0), %s1486_s16, 11264  }
 0x1fe   : > { %2224 = vsyncadd (!%p1861_p0), %s1486_s16, 4294956032  ;;  %s4343_s17 = sadd.s32 4294967294, %s2255_s23  }
 0x1ff   : > { %s1494_s26 = sand.u32 1, %s4343_s17  }
 0x200   : > { %s1495_s27 = scalar_lea.sflag [#allocation7], %s1494_s26 }
 0x201   : > { %2226 = dma.done.wait (!%p1861_p0), %s1495_s27, 22528  }
 0x202   : > { %2228 = vsyncadd (!%p1861_p0), %s1495_s27, 4294944768  ;;  %s1513_s28 = scalar_lea.sflag [#allocation10], %s1494_s26 }
 0x203   : > { %2230 = dma.done.wait (!%p1861_p0), %s1513_s28, 22528  }
 0x204   : > { %2232 = vsyncadd (!%p1861_p0), %s1513_s28, 4294944768  ;;  %s28_s23 = sadd.s32 1, %s2255_s23   ;;  %s4344_s21 = sld [smem:[#allocation16_spill]] }
 0x205   : > { %p25_p11 = scmp.ge.s32.totalorder %s28_s23, 5   ;;  %s4345_s22 = sld [smem:[#allocation17_spill]] }
 0x206   : > { %s4346_s18 = smov %s2239_s19  ;;  %s4347_s19 = smov %s2243_s20 }
 0x207   : > { %s4348_s20 = smov %s2363_s6  ;;  %27 = sbr.rel (!%p25_p11) target bundleno = 12 (0xc), region = 133 }
 0x20e   :  { %1527 = vsyncpa [#allocation3], 1 }
 0x20f   :  { %1529 = vsyncpa [#allocation3 + $0x1], 1 }
 0x210   :  { %1530 = vsyncpa [#allocation4], 1 }
 0x211   :  { %1532 = vsyncpa [#allocation4 + $0x1], 1 }
 0x212   :  { %1533 = vsyncpa [#allocation7], 1 }
 0x213   :  { %1535 = vsyncpa [#allocation7 + $0x1], 1 }
 0x214   :  { %1536 = vsyncpa [#allocation10], 1 }
 0x215   :  { %1538 = vsyncpa [#allocation10 + $0x1], 1 }

</bundles_post_ra>
